<compile_context>
chip_gen: v7x
topology: tpu7x:2x2x1
jax: 0.10.0
libtpu: 0.0.40
codegen_flags: <defaults>
</compile_context>

<pallas_src>
import functools

import jax
import jax.numpy as jnp
from jax import lax
from jax.experimental import pallas as pl
from jax.experimental.pallas import tpu as pltpu


# ----------------------------------------------------------------------------
# Hardware-aware budgets (v5e/v6e: 128 MiB physical VMEM, v7x: 64 MiB)
# ----------------------------------------------------------------------------
@functools.lru_cache(maxsize=1)
def _vmem_capacity_bytes():
    try:
        cap = getattr(pltpu.get_tpu_info(), "vmem_capacity_bytes", None)
        if cap:
            return int(cap)
    except Exception:
        pass
    return 64 * 1024 * 1024            # conservative (v7x-sized) fallback


def _vmem_limit_bytes():
    cap = _vmem_capacity_bytes()
    # 128 MiB parts -> 96 MiB scoped limit; 64 MiB parts (v7x) -> 48 MiB.
    return int(min(max(cap - 16 * 1024 * 1024, 32 * 1024 * 1024),
                   96 * 1024 * 1024))


def _pick_tile(total, candidates):
    """Largest candidate that divides `total`; fall back to the full extent."""
    for c in candidates:
        if total % c == 0:
            return c
    return total


def _attn_tile_candidates():
    if _vmem_capacity_bytes() >= 100 * 1024 * 1024:        # v5e / v6e
        return ((512, 256, 128, 64, 32, 16, 8),
                (1024, 512, 256, 128, 64, 32, 16, 8))
    return ((256, 128, 64, 32, 16, 8),                     # v7x (64 MiB VMEM)
            (512, 256, 128, 64, 32, 16, 8))


def _pick_row_tile(R, Din, Dout, itemsize):
    """Row tile for the Linear kernels: fits the VMEM budget (weight is resident
    and double-buffered) and keeps >=4 grid steps when possible."""
    big = _vmem_capacity_bytes() >= 100 * 1024 * 1024
    candidates = ((2048, 1024, 512, 256, 128, 64, 32, 16, 8) if big else
                  (1024, 512, 256, 128, 64, 32, 16, 8))
    limit = _vmem_limit_bytes()
    weight_bytes = 2 * Dout * Din * itemsize               # double-buffered weight
    avail = max(limit - weight_bytes - (2 << 20), 1 << 20)
    max_tr = max(8, avail // (2 * (Din + Dout) * itemsize))
    divs = [c for c in candidates if R % c == 0 and c <= max_tr]
    if not divs:
        return R
    for min_steps in (4, 2):                               # pipelining / 2 TCs (v7x)
        for c in divs:
            if R // c >= min_steps:
                return c
    return divs[0]


# ----------------------------------------------------------------------------
# Tiled Linear:  out = x @ W^T (+ b)      (PyTorch Linear weight convention)
# ----------------------------------------------------------------------------
def _linear_bias_kernel(x_ref, w_ref, b_ref, o_ref):
    # x_ref: (TR, Din), w_ref: (Dout, Din), b_ref: (1, Dout), o_ref: (TR, Dout)
    acc = lax.dot_general(
        x_ref[...], w_ref[...],
        dimension_numbers=(((1,), (1,)), ((), ())),   # contract Din, no w.T
        preferred_element_type=jnp.float32)
    o_ref[...] = (acc + b_ref[...].astype(jnp.float32)).astype(o_ref.dtype)


def _linear_nobias_kernel(x_ref, w_ref, o_ref):
    acc = lax.dot_general(
        x_ref[...], w_ref[...],
        dimension_numbers=(((1,), (1,)), ((), ())),
        preferred_element_type=jnp.float32)
    o_ref[...] = acc.astype(o_ref.dtype)


def pallas_linear(x2d, w, b=None, *, row_tile=None):
    """x2d: (R, Din), w: (Dout, Din), b: (Dout,) or None -> (R, Dout)."""
    R, Din = x2d.shape
    Dout = w.shape[0]
    tr = row_tile or _pick_row_tile(R, Din, Dout, x2d.dtype.itemsize)
    grid = (R // tr,)
    cparams = pltpu.CompilerParams(
        dimension_semantics=("parallel",),
        vmem_limit_bytes=_vmem_limit_bytes())
    out_shape = jax.ShapeDtypeStruct((R, Dout), x2d.dtype)

    if b is None:
        return pl.pallas_call(
            _linear_nobias_kernel,
            out_shape=out_shape,
            grid=grid,
            in_specs=[
                pl.BlockSpec((tr, Din), lambda i: (i, 0)),
                pl.BlockSpec((Dout, Din), lambda i: (0, 0)),
            ],
            out_specs=pl.BlockSpec((tr, Dout), lambda i: (i, 0)),
            compiler_params=cparams,
        )(x2d, w)

    b2d = b.reshape(1, Dout)
    return pl.pallas_call(
        _linear_bias_kernel,
        out_shape=out_shape,
        grid=grid,
        in_specs=[
            pl.BlockSpec((tr, Din), lambda i: (i, 0)),
            pl.BlockSpec((Dout, Din), lambda i: (0, 0)),
            pl.BlockSpec((1, Dout), lambda i: (0, 0)),
        ],
        out_specs=pl.BlockSpec((tr, Dout), lambda i: (i, 0)),
        compiler_params=cparams,
    )(x2d, w, b2d)


# ----------------------------------------------------------------------------
# Flash-style attention.
#   grid = (batch, head_blocks, q_tiles, kv_tiles); each head block covers
#   heads_per_block heads (head_block = heads_per_block * dim_head lanes,
#   128-lane aligned when possible) so stores are lane-dense and only a small
#   static head loop runs inside the kernel.
# ----------------------------------------------------------------------------
def _flash_attention_kernel(q_ref, k_ref, v_ref, o_ref,
                            m_scr, l_scr, acc_scr,
                            *, heads_per_block, dim_head, scale):
    ki = pl.program_id(3)

    @pl.when(ki == 0)
    def _():
        m_scr[...] = jnp.full_like(m_scr, -jnp.inf)
        l_scr[...] = jnp.zeros_like(l_scr)
        acc_scr[...] = jnp.zeros_like(acc_scr)

    q = q_ref[0]   # (tq,  head_block)  native dtype
    k = k_ref[0]   # (tkv, head_block)
    v = v_ref[0]   # (tkv, head_block)

    for hh in range(heads_per_block):          # small static loop (<= 2 typical)
        lo = hh * dim_head
        hi = lo + dim_head
        q_h = q[:, lo:hi]                       # no f32 upcast; MXU runs native
        k_h = k[:, lo:hi]
        v_h = v[:, lo:hi]

        s = lax.dot_general(q_h, k_h,
                            dimension_numbers=(((1,), (1,)), ((), ())),
                            preferred_element_type=jnp.float32)      # (tq, tkv) f32
        s = s * scale                                                 # scale f32 scores

        m_prev = m_scr[hh]                                            # (tq, 1)
        m_new = jnp.maximum(m_prev, jnp.max(s, axis=-1, keepdims=True))
        alpha = jnp.exp(m_prev - m_new)
        p = jnp.exp(s - m_new)
        l_scr[hh] = alpha * l_scr[hh] + jnp.sum(p, axis=-1, keepdims=True)

        pv = lax.dot_general(p.astype(v_h.dtype), v_h,
                             dimension_numbers=(((1,), (0,)), ((), ())),
                             preferred_element_type=jnp.float32)      # (tq, dh)
        acc_scr[hh] = alpha * acc_scr[hh] + pv
        m_scr[hh] = m_new

    @pl.when(ki == pl.num_programs(3) - 1)
    def _():
        outs = [acc_scr[hh] * pl.reciprocal(l_scr[hh], approx=True)
                for hh in range(heads_per_block)]
        blk = outs[0] if heads_per_block == 1 else jnp.concatenate(outs, axis=-1)
        o_ref[0] = blk.astype(o_ref.dtype)      # lane-dense head_block-wide store


def _choose_head_block(dim_head, inner):
    if dim_head % 128 == 0:
        return dim_head                         # one head per grid step
    if 128 % dim_head == 0 and inner % 128 == 0:
        return 128                              # 128-lane aligned head group
    return inner                                # fallback: all heads in one block


def pallas_attention(q_arr, k_arr, v_arr, *, heads, dim_head,
                     q_col=0, k_col=0, v_col=0, q_tile=None, kv_tile=None):
    """q_arr: (B, N, >=inner); k_arr/v_arr: (B, M, >=inner) (possibly the same
    fused array). *_col select the inner-wide column block inside those arrays.
    Returns (B, N, inner)."""
    B, N, _ = q_arr.shape
    M = k_arr.shape[1]
    inner = heads * dim_head
    head_block = _choose_head_block(dim_head, inner)
    heads_per_block = head_block // dim_head
    n_head_blocks = inner // head_block
    q_base = q_col * inner // head_block
    k_base = k_col * inner // head_block
    v_base = v_col * inner // head_block

    tq_cands, tkv_cands = _attn_tile_candidates()
    tq = q_tile or _pick_tile(N, tq_cands)
    tkv = kv_tile or _pick_tile(M, tkv_cands)
    scale = float(dim_head) ** (-0.5)

    kernel = functools.partial(_flash_attention_kernel,
                               heads_per_block=heads_per_block,
                               dim_head=dim_head, scale=scale)
    return pl.pallas_call(
        kernel,
        out_shape=jax.ShapeDtypeStruct((B, N, inner), q_arr.dtype),
        grid=(B, n_head_blocks, N // tq, M // tkv),
        in_specs=[
            pl.BlockSpec((1, tq, head_block),
                         lambda b, hb, qi, ki, base=q_base: (b, qi, base + hb)),
            pl.BlockSpec((1, tkv, head_block),
                         lambda b, hb, qi, ki, base=k_base: (b, ki, base + hb)),
            pl.BlockSpec((1, tkv, head_block),
                         lambda b, hb, qi, ki, base=v_base: (b, ki, base + hb)),
        ],
        out_specs=pl.BlockSpec((1, tq, head_block),
                               lambda b, hb, qi, ki: (b, qi, hb)),
        scratch_shapes=[
            pltpu.VMEM((heads_per_block, tq, 1), jnp.float32),          # running max
            pltpu.VMEM((heads_per_block, tq, 1), jnp.float32),          # running sum
            pltpu.VMEM((heads_per_block, tq, dim_head), jnp.float32),   # output acc
        ],
        compiler_params=pltpu.CompilerParams(
            dimension_semantics=("parallel", "parallel", "parallel", "arbitrary"),
            vmem_limit_bytes=_vmem_limit_bytes()),
    )(q_arr, k_arr, v_arr)


# ----------------------------------------------------------------------------
# CrossAttention forward (crossattn conditioner)
# ----------------------------------------------------------------------------
def cross_attention_forward(params, x, context=None, mask=None, *, heads, dim_head):
    if mask is not None:
        # TODO(synk): attention mask path of the PyTorch module is not implemented.
        raise NotImplementedError("attention mask is not supported")
    B, N, Dq = x.shape
    inner = heads * dim_head
    fuse = (inner % 128 == 0)   # fused column addressing needs lane-aligned blocks

    if context is None:
        # Self-attention: fused QKV projection -> x read from HBM once.
        if fuse:
            w_qkv = params.get("wqkv")
            if w_qkv is None:
                w_qkv = jnp.concatenate([params["wq"], params["wk"], params["wv"]], axis=0)
            qkv = pallas_linear(x.reshape(B * N, Dq), w_qkv).reshape(B, N, 3 * inner)
            out = pallas_attention(qkv, qkv, qkv, heads=heads, dim_head=dim_head,
                                   q_col=0, k_col=1, v_col=2)
        else:
            x2d = x.reshape(B * N, Dq)
            q = pallas_linear(x2d, params["wq"]).reshape(B, N, inner)
            k = pallas_linear(x2d, params["wk"]).reshape(B, N, inner)
            v = pallas_linear(x2d, params["wv"]).reshape(B, N, inner)
            out = pallas_attention(q, k, v, heads=heads, dim_head=dim_head)
    else:
        M, Dc = context.shape[1], context.shape[2]
        q = pallas_linear(x.reshape(B * N, Dq), params["wq"]).reshape(B, N, inner)
        if fuse:
            w_kv = params.get("wkv")
            if w_kv is None:
                w_kv = jnp.concatenate([params["wk"], params["wv"]], axis=0)
            kv = pallas_linear(context.reshape(B * M, Dc), w_kv).reshape(B, M, 2 * inner)
            out = pallas_attention(q, kv, kv, heads=heads, dim_head=dim_head,
                                   q_col=0, k_col=0, v_col=1)
        else:
            c2d = context.reshape(B * M, Dc)
            k = pallas_linear(c2d, params["wk"]).reshape(B, M, inner)
            v = pallas_linear(c2d, params["wv"]).reshape(B, M, inner)
            out = pallas_attention(q, k, v, heads=heads, dim_head=dim_head)

    # to_out: Linear(inner_dim, query_dim) + Dropout(0.0) (identity)
    out = pallas_linear(out.reshape(B * N, inner), params["wo"], params["bo"])
    return out.reshape(B, N, Dq)


# ----------------------------------------------------------------------------
# Concat conditioner: 1x1 conv over channels, computed directly in NCHW.
#   (B,C,H,W) -> (B,C,H*W) reshape is free; kernel does W @ x_tile so the
#   output block is (C_out, tile_hw) with a lane-dense (multiple of 128) last
#   dim. No NCHW<->NHWC transposes.
# ----------------------------------------------------------------------------
def _conv1x1_kernel(x_ref, w_ref, b_ref, o_ref):
    # x_ref: (1, C_in, T), w_ref: (C_out, C_in), b_ref: (C_out, 1), o: (1, C_out, T)
    acc = lax.dot_general(
        w_ref[...], x_ref[0],
        dimension_numbers=(((1,), (0,)), ((), ())),
        preferred_element_type=jnp.float32)
    o_ref[0] = (acc + b_ref[...].astype(jnp.float32)).astype(o_ref.dtype)


def concat_conditioner_forward(params, c_concat):
    B, C, H, W = c_concat.shape
    HW = H * W
    w = params["w"]                     # (C_out, C_in)
    b2d = params["b"].reshape(-1, 1)    # (C_out, 1)
    C_out = w.shape[0]
    x = c_concat.reshape(B, C, HW)      # free reshape, stays NCHW
    thw = _pick_tile(HW, (8192, 4096, 2048, 1024, 512, 256, 128))
    y = pl.pallas_call(
        _conv1x1_kernel,
        out_shape=jax.ShapeDtypeStruct((B, C_out, HW), c_concat.dtype),
        grid=(B, HW // thw),
        in_specs=[
            pl.BlockSpec((1, C, thw), lambda i, j: (i, 0, j)),
            pl.BlockSpec((C_out, C), lambda i, j: (0, 0)),
            pl.BlockSpec((C_out, 1), lambda i, j: (0, 0)),
        ],
        out_specs=pl.BlockSpec((1, C_out, thw), lambda i, j: (i, 0, j)),
        compiler_params=pltpu.CompilerParams(
            dimension_semantics=("parallel", "parallel"),
            vmem_limit_bytes=_vmem_limit_bytes()),
    )(x, w, b2d)
    return y.reshape(B, C_out, H, W)


# ----------------------------------------------------------------------------
# HybridConditioner forward
# ----------------------------------------------------------------------------
def hybrid_conditioner_forward(params, c_concat, c_crossattn, *, heads, dim_head):
    cc = concat_conditioner_forward(params["concat"], c_concat)
    ca = cross_attention_forward(params["attn"], c_crossattn, context=None,
                                 heads=heads, dim_head=dim_head)
    return {"c_concat": [cc], "c_crossattn": [ca]}


# ----------------------------------------------------------------------------
# Parameter init (nn.Linear convention: weight shape (out, in)).
# Fused QKV / KV projection weights are precomputed here (not per-forward).
# ----------------------------------------------------------------------------
def init_hybrid_params(key, *, concat_ch_in, concat_ch_out, query_dim,
                       context_dim=None, heads=8, dim_head=64, dtype=jnp.float32):
    if context_dim is None:
        context_dim = query_dim
    inner = heads * dim_head
    ks = jax.random.split(key, 7)
    wq = 0.02 * jax.random.normal(ks[2], (inner, query_dim), dtype)
    wk = 0.02 * jax.random.normal(ks[3], (inner, context_dim), dtype)
    wv = 0.02 * jax.random.normal(ks[4], (inner, context_dim), dtype)
    attn = {
        "wq": wq, "wk": wk, "wv": wv,
        "wo": 0.02 * jax.random.normal(ks[5], (query_dim, inner), dtype),
        "bo": 0.02 * jax.random.normal(ks[6], (query_dim,), dtype),
        "wkv": jnp.concatenate([wk, wv], axis=0),
    }
    if query_dim == context_dim:
        attn["wqkv"] = jnp.concatenate([wq, wk, wv], axis=0)
    return {
        "concat": {
            "w": 0.05 * jax.random.normal(ks[0], (concat_ch_out, concat_ch_in), dtype),
            "b": 0.05 * jax.random.normal(ks[1], (concat_ch_out,), dtype),
        },
        "attn": attn,
    }


# ----------------------------------------------------------------------------
# Pure-JAX references
# ----------------------------------------------------------------------------
def cross_attention_ref(params, x, context=None, *, heads, dim_head):
    if context is None:
        context = x
    B, N, Dq = x.shape
    M = context.shape[1]
    inner = heads * dim_head
    scale = dim_head ** (-0.5)
    q = x @ params["wq"].T
    k = context @ params["wk"].T
    v = context @ params["wv"].T

    def sh(t, s):
        return t.reshape(B, s, heads, dim_head).transpose(0, 2, 1, 3)

    qh, kh, vh = sh(q, N), sh(k, M), sh(v, M)
    sim = jnp.einsum("bhid,bhjd->bhij", qh, kh) * scale
    attn = jax.nn.softmax(sim, axis=-1)
    out = jnp.einsum("bhij,bhjd->bhid", attn, vh)
    out = out.transpose(0, 2, 1, 3).reshape(B, N, inner)
    return out @ params["wo"].T + params["bo"]


def hybrid_conditioner_ref(params, c_concat, c_crossattn, *, heads, dim_head):
    w, b = params["concat"]["w"], params["concat"]["b"]
    cc = jnp.einsum("bchw,oc->bohw", c_concat, w) + b[None, :, None, None]
    ca = cross_attention_ref(params["attn"], c_crossattn, None,
                             heads=heads, dim_head=dim_head)
    return {"c_concat": [cc], "c_crossattn": [ca]}


if __name__ == "__main__":
    # Small shapes consistent with the module's forward.
    B = 2
    C, H, W = 4, 16, 16        # c_concat is an image-like NCHW tensor
    N = 16                     # c_crossattn token count
    query_dim = 32
    heads = 2
    dim_head = 64              # inner_dim = 128 -> lane-dense attention blocks

    key = jax.random.PRNGKey(0)
    kp, k1, k2 = jax.random.split(key, 3)
    params = init_hybrid_params(kp, concat_ch_in=C, concat_ch_out=C,
                                query_dim=query_dim, heads=heads, dim_head=dim_head)
    c_concat = jax.random.normal(k1, (B, C, H, W), jnp.float32)
    c_crossattn = jax.random.normal(k2, (B, N, query_dim), jnp.float32)

    fwd = jax.jit(functools.partial(hybrid_conditioner_forward,
                                    heads=heads, dim_head=dim_head))
    out = fwd(params, c_concat, c_crossattn)
    out = jax.block_until_ready(out)

    ref = hybrid_conditioner_ref(params, c_concat, c_crossattn,
                                 heads=heads, dim_head=dim_head)

    cc, ca = out["c_concat"][0], out["c_crossattn"][0]
    assert cc.shape == (B, C, H, W)
    assert ca.shape == (B, N, query_dim)
    assert jnp.allclose(cc, ref["c_concat"][0], atol=2e-3, rtol=2e-3), "c_concat mismatch"
    assert jnp.allclose(ca, ref["c_crossattn"][0], atol=2e-3, rtol=2e-3), "c_crossattn mismatch"

    print("KERNEL_OK")
</pallas_src>

<mosaic_0001>
module attributes {stable_mosaic.version = 11 : i64} {
  func.func @_linear_nobias_kernel(%arg0: i32, %arg1: memref<8x32xf32, #tpu.memory_space<vmem>>, %arg2: memref<384x32xf32, #tpu.memory_space<vmem>>, %arg3: memref<8x384xf32, #tpu.memory_space<vmem>>) attributes {dimension_semantics = [#tpu.dimension_semantics<parallel>], iteration_bounds = array<i64: 4>, scalar_prefetch = 0 : i64, scratch_operands = 0 : i64, tpu.core_type = #tpu.core_type<tc>, window_params = [{transform_indices = @transform_0, window_bounds = array<i64: 8, 32>}, {pipeline_mode = #tpu.pipeline_mode<synchronous>, transform_indices = @transform_1, window_bounds = array<i64: 384, 32>}, {transform_indices = @transform_2, window_bounds = array<i64: 8, 384>}]} {
    %c0 = arith.constant 0 : index
    %c0_0 = arith.constant 0 : index
    %0 = vector.load %arg1[%c0, %c0_0] : memref<8x32xf32, #tpu.memory_space<vmem>>, vector<8x32xf32>
    %c0_1 = arith.constant 0 : index
    %c0_2 = arith.constant 0 : index
    %1 = vector.load %arg2[%c0_1, %c0_2] : memref<384x32xf32, #tpu.memory_space<vmem>>, vector<384x32xf32>
    %cst = arith.constant dense<0.000000e+00> : vector<8x384xf32>
    %2 = tpu.matmul %0, %1, %cst {dimension_numbers = #tpu.dot_dimension_numbers<[1], [1], [0], [0], [0, 0, 1, 0], [], []>} : vector<8x32xf32>, vector<384x32xf32>, vector<8x384xf32> -> vector<8x384xf32>
    %c0_3 = arith.constant 0 : index
    %c0_4 = arith.constant 0 : index
    %3 = vector.load %arg3[%c0_3, %c0_4] : memref<8x384xf32, #tpu.memory_space<vmem>>, vector<8x384xf32>
    tpu.vector_store %arg3[%c0_3, %c0_4], %2 {strides = array<i32>} : memref<8x384xf32, #tpu.memory_space<vmem>>, vector<8x384xf32>,
    return
  }
  func.func @transform_0(%arg0: i32) -> (i32, i32) {
    %c0_i32 = arith.constant 0 : i32
    %c0_i32_0 = arith.constant 0 : i32
    return %arg0, %c0_i32 : i32, i32
  }
  func.func @transform_1(%arg0: i32) -> (i32, i32) {
    %c0_i32 = arith.constant 0 : i32
    %c0_i32_0 = arith.constant 0 : i32
    %c0_i32_1 = arith.constant 0 : i32
    return %c0_i32, %c0_i32_0 : i32, i32
  }
  func.func @transform_2(%arg0: i32) -> (i32, i32) {
    %c0_i32 = arith.constant 0 : i32
    %c0_i32_0 = arith.constant 0 : i32
    return %arg0, %c0_i32 : i32, i32
  }
}

module attributes {stable_mosaic.version = 11 : i64} {
  func.func @_linear_bias_kernel(%arg0: i32, %arg1: memref<8x128xf32, #tpu.memory_space<vmem>>, %arg2: memref<32x128xf32, #tpu.memory_space<vmem>>, %arg3: memref<1x32xf32, #tpu.memory_space<vmem>>, %arg4: memref<8x32xf32, #tpu.memory_space<vmem>>) attributes {dimension_semantics = [#tpu.dimension_semantics<parallel>], iteration_bounds = array<i64: 4>, scalar_prefetch = 0 : i64, scratch_operands = 0 : i64, tpu.core_type = #tpu.core_type<tc>, window_params = [{transform_indices = @transform_0, window_bounds = array<i64: 8, 128>}, {pipeline_mode = #tpu.pipeline_mode<synchronous>, transform_indices = @transform_1, window_bounds = array<i64: 32, 128>}, {pipeline_mode = #tpu.pipeline_mode<synchronous>, transform_indices = @transform_2, window_bounds = array<i64: 1, 32>}, {transform_indices = @transform_3, window_bounds = array<i64: 8, 32>}]} {
    %c0 = arith.constant 0 : index
    %c0_0 = arith.constant 0 : index
    %0 = vector.load %arg1[%c0, %c0_0] : memref<8x128xf32, #tpu.memory_space<vmem>>, vector<8x128xf32>
    %c0_1 = arith.constant 0 : index
    %c0_2 = arith.constant 0 : index
    %1 = vector.load %arg2[%c0_1, %c0_2] : memref<32x128xf32, #tpu.memory_space<vmem>>, vector<32x128xf32>
    %cst = arith.constant dense<0.000000e+00> : vector<8x32xf32>
    %2 = tpu.matmul %0, %1, %cst {dimension_numbers = #tpu.dot_dimension_numbers<[1], [1], [0], [0], [0, 0, 1, 0], [], []>} : vector<8x128xf32>, vector<32x128xf32>, vector<8x32xf32> -> vector<8x32xf32>
    %c0_3 = arith.constant 0 : index
    %c0_4 = arith.constant 0 : index
    %3 = vector.load %arg3[%c0_3, %c0_4] : memref<1x32xf32, #tpu.memory_space<vmem>>, vector<1x32xf32>
    %4 = vector.broadcast %3 : vector<1x32xf32> to vector<8x32xf32>
    %5 = arith.addf %2, %4 : vector<8x32xf32>
    %c0_5 = arith.constant 0 : index
    %c0_6 = arith.constant 0 : index
    %6 = vector.load %arg4[%c0_5, %c0_6] : memref<8x32xf32, #tpu.memory_space<vmem>>, vector<8x32xf32>
    tpu.vector_store %arg4[%c0_5, %c0_6], %5 {strides = array<i32>} : memref<8x32xf32, #tpu.memory_space<vmem>>, vector<8x32xf32>,
    return
  }
  func.func @transform_0(%arg0: i32) -> (i32, i32) {
    %c0_i32 = arith.constant 0 : i32
    %c0_i32_0 = arith.constant 0 : i32
    return %arg0, %c0_i32 : i32, i32
  }
  func.func @transform_1(%arg0: i32) -> (i32, i32) {
    %c0_i32 = arith.constant 0 : i32
    %c0_i32_0 = arith.constant 0 : i32
    %c0_i32_1 = arith.constant 0 : i32
    return %c0_i32, %c0_i32_0 : i32, i32
  }
  func.func @transform_2(%arg0: i32) -> (i32, i32) {
    %c0_i32 = arith.constant 0 : i32
    %c0_i32_0 = arith.constant 0 : i32
    %c0_i32_1 = arith.constant 0 : i32
    return %c0_i32, %c0_i32_0 : i32, i32
  }
  func.func @transform_3(%arg0: i32) -> (i32, i32) {
    %c0_i32 = arith.constant 0 : i32
    %c0_i32_0 = arith.constant 0 : i32
    return %arg0, %c0_i32 : i32, i32
  }
}

module attributes {stable_mosaic.version = 11 : i64} {
  func.func @_flash_attention_kernel(%arg0: i32, %arg1: i32, %arg2: i32, %arg3: i32, %arg4: memref<1x16x128xf32, #tpu.memory_space<vmem>>, %arg5: memref<1x16x128xf32, #tpu.memory_space<vmem>>, %arg6: memref<1x16x128xf32, #tpu.memory_space<vmem>>, %arg7: memref<1x16x128xf32, #tpu.memory_space<vmem>>, %arg8: memref<2x16x1xf32, #tpu.memory_space<vmem>>, %arg9: memref<2x16x1xf32, #tpu.memory_space<vmem>>, %arg10: memref<2x16x64xf32, #tpu.memory_space<vmem>>) attributes {dimension_semantics = [#tpu.dimension_semantics<parallel>, #tpu.dimension_semantics<parallel>, #tpu.dimension_semantics<parallel>, #tpu.dimension_semantics<arbitrary>], iteration_bounds = array<i64: 2, 1, 1, 1>, scalar_prefetch = 0 : i64, scratch_operands = 3 : i64, tpu.core_type = #tpu.core_type<tc>, window_params = [{transform_indices = @transform_0, window_bounds = array<i64: 1, 16, 128>}, {transform_indices = @transform_1, window_bounds = array<i64: 1, 16, 128>}, {transform_indices = @transform_2, window_bounds = array<i64: 1, 16, 128>}, {transform_indices = @transform_3, window_bounds = array<i64: 1, 16, 128>}]} {
    %c0_i32 = arith.constant 0 : i32
    %0 = arith.cmpi eq, %arg3, %c0_i32 : i32
    %1 = arith.extui %0 : i1 to i32
    %c0_i32_0 = arith.constant 0 : i32
    %2 = arith.cmpi ne, %1, %c0_i32_0 : i32
    scf.if %2 {
      %cst_55 = arith.constant 0xFF800000 : f32
      %86 = vector.broadcast %cst_55 : f32 to vector<2x16x1xf32>
      %c0_56 = arith.constant 0 : index
      %c0_57 = arith.constant 0 : index
      %c0_58 = arith.constant 0 : index
      %87 = vector.load %arg8[%c0_56, %c0_57, %c0_58] : memref<2x16x1xf32, #tpu.memory_space<vmem>>, vector<2x16x1xf32>
      tpu.vector_store %arg8[%c0_56, %c0_57, %c0_58], %86 {strides = array<i32>} : memref<2x16x1xf32, #tpu.memory_space<vmem>>, vector<2x16x1xf32>,
      %cst_59 = arith.constant 0.000000e+00 : f32
      %88 = vector.broadcast %cst_59 : f32 to vector<2x16x1xf32>
      %c0_60 = arith.constant 0 : index
      %c0_61 = arith.constant 0 : index
      %c0_62 = arith.constant 0 : index
      %89 = vector.load %arg9[%c0_60, %c0_61, %c0_62] : memref<2x16x1xf32, #tpu.memory_space<vmem>>, vector<2x16x1xf32>
      tpu.vector_store %arg9[%c0_60, %c0_61, %c0_62], %88 {strides = array<i32>} : memref<2x16x1xf32, #tpu.memory_space<vmem>>, vector<2x16x1xf32>,
      %cst_63 = arith.constant 0.000000e+00 : f32
      %90 = vector.broadcast %cst_63 : f32 to vector<2x16x64xf32>
      %c0_64 = arith.constant 0 : index
      %c0_65 = arith.constant 0 : index
      %c0_66 = arith.constant 0 : index
      %91 = vector.load %arg10[%c0_64, %c0_65, %c0_66] : memref<2x16x64xf32, #tpu.memory_space<vmem>>, vector<2x16x64xf32>
      tpu.vector_store %arg10[%c0_64, %c0_65, %c0_66], %90 {strides = array<i32>} : memref<2x16x64xf32, #tpu.memory_space<vmem>>, vector<2x16x64xf32>,
    } else {
    }
    %c0 = arith.constant 0 : index
    %c0_1 = arith.constant 0 : index
    %c0_2 = arith.constant 0 : index
    %3 = vector.load %arg4[%c0, %c0_1, %c0_2] : memref<1x16x128xf32, #tpu.memory_space<vmem>>, vector<1x16x128xf32>
    %4 = vector.shape_cast %3 : vector<1x16x128xf32> to vector<16x128xf32>
    %c0_3 = arith.constant 0 : index
    %c0_4 = arith.constant 0 : index
    %c0_5 = arith.constant 0 : index
    %5 = vector.load %arg5[%c0_3, %c0_4, %c0_5] : memref<1x16x128xf32, #tpu.memory_space<vmem>>, vector<1x16x128xf32>
    %6 = vector.shape_cast %5 : vector<1x16x128xf32> to vector<16x128xf32>
    %c0_6 = arith.constant 0 : index
    %c0_7 = arith.constant 0 : index
    %c0_8 = arith.constant 0 : index
    %7 = vector.load %arg6[%c0_6, %c0_7, %c0_8] : memref<1x16x128xf32, #tpu.memory_space<vmem>>, vector<1x16x128xf32>
    %8 = vector.shape_cast %7 : vector<1x16x128xf32> to vector<16x128xf32>
    %9 = vector.extract_strided_slice %4 {offsets = [0, 0], sizes = [16, 64], strides = [1, 1]} : vector<16x128xf32> to vector<16x64xf32>
    %10 = vector.extract_strided_slice %6 {offsets = [0, 0], sizes = [16, 64], strides = [1, 1]} : vector<16x128xf32> to vector<16x64xf32>
    %11 = vector.extract_strided_slice %8 {offsets = [0, 0], sizes = [16, 64], strides = [1, 1]} : vector<16x128xf32> to vector<16x64xf32>
    %cst = arith.constant dense<0.000000e+00> : vector<16x16xf32>
    %12 = tpu.matmul %9, %10, %cst {dimension_numbers = #tpu.dot_dimension_numbers<[1], [1], [0], [0], [0, 0, 1, 0], [], []>} : vector<16x64xf32>, vector<16x64xf32>, vector<16x16xf32> -> vector<16x16xf32>
    %cst_9 = arith.constant 1.250000e-01 : f32
    %13 = vector.broadcast %cst_9 : f32 to vector<16x16xf32>
    %14 = arith.mulf %12, %13 : vector<16x16xf32>
    %c0_10 = arith.constant 0 : index
    %c0_11 = arith.constant 0 : index
    %c0_12 = arith.constant 0 : index
    %15 = vector.load %arg8[%c0_10, %c0_11, %c0_12] : memref<2x16x1xf32, #tpu.memory_space<vmem>>, vector<1x16x1xf32>
    %16 = vector.shape_cast %15 : vector<1x16x1xf32> to vector<16x1xf32>
    %cst_13 = arith.constant dense<0xFF800000> : vector<16xf32>
    %17 = vector.multi_reduction <maximumf>, %14, %cst_13 [1] : vector<16x16xf32> to vector<16xf32>
    %18 = vector.shape_cast %17 : vector<16xf32> to vector<16x1xf32>
    %19 = arith.maximumf %16, %18 : vector<16x1xf32>
    %20 = arith.subf %16, %19 : vector<16x1xf32>
    %21 = math.exp %20 : vector<16x1xf32>
    %22 = vector.broadcast %19 : vector<16x1xf32> to vector<16x16xf32>
    %23 = arith.subf %14, %22 : vector<16x16xf32>
    %24 = math.exp %23 : vector<16x16xf32>
    %c0_14 = arith.constant 0 : index
    %c0_15 = arith.constant 0 : index
    %c0_16 = arith.constant 0 : index
    %25 = vector.load %arg9[%c0_14, %c0_15, %c0_16] : memref<2x16x1xf32, #tpu.memory_space<vmem>>, vector<1x16x1xf32>
    %26 = vector.shape_cast %25 : vector<1x16x1xf32> to vector<16x1xf32>
    %27 = arith.mulf %21, %26 : vector<16x1xf32>
    %cst_17 = arith.constant dense<0.000000e+00> : vector<16xf32>
    %28 = vector.multi_reduction <add>, %24, %cst_17 [1] : vector<16x16xf32> to vector<16xf32>
    %29 = vector.shape_cast %28 : vector<16xf32> to vector<16x1xf32>
    %30 = arith.addf %27, %29 : vector<16x1xf32>
    %c0_18 = arith.constant 0 : index
    %c0_19 = arith.constant 0 : index
    %c0_20 = arith.constant 0 : index
    %31 = vector.load %arg9[%c0_18, %c0_19, %c0_20] : memref<2x16x1xf32, #tpu.memory_space<vmem>>, vector<1x16x1xf32>
    %32 = vector.shape_cast %31 : vector<1x16x1xf32> to vector<16x1xf32>
    %33 = vector.shape_cast %30 : vector<16x1xf32> to vector<1x16x1xf32>
    tpu.vector_store %arg9[%c0_18, %c0_19, %c0_20], %33 {strides = array<i32>} : memref<2x16x1xf32, #tpu.memory_space<vmem>>, vector<1x16x1xf32>,
    %cst_21 = arith.constant dense<0.000000e+00> : vector<16x64xf32>
    %34 = tpu.matmul %24, %11, %cst_21 {dimension_numbers = #tpu.dot_dimension_numbers<[1], [0], [0], [1], [0, 0, 1, 1], [], []>} : vector<16x16xf32>, vector<16x64xf32>, vector<16x64xf32> -> vector<16x64xf32>
    %c0_22 = arith.constant 0 : index
    %c0_23 = arith.constant 0 : index
    %c0_24 = arith.constant 0 : index
    %35 = vector.load %arg10[%c0_22, %c0_23, %c0_24] : memref<2x16x64xf32, #tpu.memory_space<vmem>>, vector<1x16x64xf32>
    %36 = vector.shape_cast %35 : vector<1x16x64xf32> to vector<16x64xf32>
    %37 = vector.broadcast %21 : vector<16x1xf32> to vector<16x64xf32>
    %38 = arith.mulf %37, %36 : vector<16x64xf32>
    %39 = arith.addf %38, %34 : vector<16x64xf32>
    %c0_25 = arith.constant 0 : index
    %c0_26 = arith.constant 0 : index
    %c0_27 = arith.constant 0 : index
    %40 = vector.load %arg10[%c0_25, %c0_26, %c0_27] : memref<2x16x64xf32, #tpu.memory_space<vmem>>, vector<1x16x64xf32>
    %41 = vector.shape_cast %40 : vector<1x16x64xf32> to vector<16x64xf32>
    %42 = vector.shape_cast %39 : vector<16x64xf32> to vector<1x16x64xf32>
    tpu.vector_store %arg10[%c0_25, %c0_26, %c0_27], %42 {strides = array<i32>} : memref<2x16x64xf32, #tpu.memory_space<vmem>>, vector<1x16x64xf32>,
    %c0_28 = arith.constant 0 : index
    %c0_29 = arith.constant 0 : index
    %c0_30 = arith.constant 0 : index
    %43 = vector.load %arg8[%c0_28, %c0_29, %c0_30] : memref<2x16x1xf32, #tpu.memory_space<vmem>>, vector<1x16x1xf32>
    %44 = vector.shape_cast %43 : vector<1x16x1xf32> to vector<16x1xf32>
    %45 = vector.shape_cast %19 : vector<16x1xf32> to vector<1x16x1xf32>
    tpu.vector_store %arg8[%c0_28, %c0_29, %c0_30], %45 {strides = array<i32>} : memref<2x16x1xf32, #tpu.memory_space<vmem>>, vector<1x16x1xf32>,
    %46 = vector.extract_strided_slice %4 {offsets = [0, 64], sizes = [16, 64], strides = [1, 1]} : vector<16x128xf32> to vector<16x64xf32>
    %47 = vector.extract_strided_slice %6 {offsets = [0, 64], sizes = [16, 64], strides = [1, 1]} : vector<16x128xf32> to vector<16x64xf32>
    %48 = vector.extract_strided_slice %8 {offsets = [0, 64], sizes = [16, 64], strides = [1, 1]} : vector<16x128xf32> to vector<16x64xf32>
    %cst_31 = arith.constant dense<0.000000e+00> : vector<16x16xf32>
    %49 = tpu.matmul %46, %47, %cst_31 {dimension_numbers = #tpu.dot_dimension_numbers<[1], [1], [0], [0], [0, 0, 1, 0], [], []>} : vector<16x64xf32>, vector<16x64xf32>, vector<16x16xf32> -> vector<16x16xf32>
    %cst_32 = arith.constant 1.250000e-01 : f32
    %50 = vector.broadcast %cst_32 : f32 to vector<16x16xf32>
    %51 = arith.mulf %49, %50 : vector<16x16xf32>
    %c1 = arith.constant 1 : index
    %c0_33 = arith.constant 0 : index
    %c0_34 = arith.constant 0 : index
    %52 = vector.load %arg8[%c1, %c0_33, %c0_34] : memref<2x16x1xf32, #tpu.memory_space<vmem>>, vector<1x16x1xf32>
    %53 = vector.shape_cast %52 : vector<1x16x1xf32> to vector<16x1xf32>
    %cst_35 = arith.constant dense<0xFF800000> : vector<16xf32>
    %54 = vector.multi_reduction <maximumf>, %51, %cst_35 [1] : vector<16x16xf32> to vector<16xf32>
    %55 = vector.shape_cast %54 : vector<16xf32> to vector<16x1xf32>
    %56 = arith.maximumf %53, %55 : vector<16x1xf32>
    %57 = arith.subf %53, %56 : vector<16x1xf32>
    %58 = math.exp %57 : vector<16x1xf32>
    %59 = vector.broadcast %56 : vector<16x1xf32> to vector<16x16xf32>
    %60 = arith.subf %51, %59 : vector<16x16xf32>
    %61 = math.exp %60 : vector<16x16xf32>
    %c1_36 = arith.constant 1 : index
    %c0_37 = arith.constant 0 : index
    %c0_38 = arith.constant 0 : index
    %62 = vector.load %arg9[%c1_36, %c0_37, %c0_38] : memref<2x16x1xf32, #tpu.memory_space<vmem>>, vector<1x16x1xf32>
    %63 = vector.shape_cast %62 : vector<1x16x1xf32> to vector<16x1xf32>
    %64 = arith.mulf %58, %63 : vector<16x1xf32>
    %cst_39 = arith.constant dense<0.000000e+00> : vector<16xf32>
    %65 = vector.multi_reduction <add>, %61, %cst_39 [1] : vector<16x16xf32> to vector<16xf32>
    %66 = vector.shape_cast %65 : vector<16xf32> to vector<16x1xf32>
    %67 = arith.addf %64, %66 : vector<16x1xf32>
    %c1_40 = arith.constant 1 : index
    %c0_41 = arith.constant 0 : index
    %c0_42 = arith.constant 0 : index
    %68 = vector.load %arg9[%c1_40, %c0_41, %c0_42] : memref<2x16x1xf32, #tpu.memory_space<vmem>>, vector<1x16x1xf32>
    %69 = vector.shape_cast %68 : vector<1x16x1xf32> to vector<16x1xf32>
    %70 = vector.shape_cast %67 : vector<16x1xf32> to vector<1x16x1xf32>
    tpu.vector_store %arg9[%c1_40, %c0_41, %c0_42], %70 {strides = array<i32>} : memref<2x16x1xf32, #tpu.memory_space<vmem>>, vector<1x16x1xf32>,
    %cst_43 = arith.constant dense<0.000000e+00> : vector<16x64xf32>
    %71 = tpu.matmul %61, %48, %cst_43 {dimension_numbers = #tpu.dot_dimension_numbers<[1], [0], [0], [1], [0, 0, 1, 1], [], []>} : vector<16x16xf32>, vector<16x64xf32>, vector<16x64xf32> -> vector<16x64xf32>
    %c1_44 = arith.constant 1 : index
    %c0_45 = arith.constant 0 : index
    %c0_46 = arith.constant 0 : index
    %72 = vector.load %arg10[%c1_44, %c0_45, %c0_46] : memref<2x16x64xf32, #tpu.memory_space<vmem>>, vector<1x16x64xf32>
    %73 = vector.shape_cast %72 : vector<1x16x64xf32> to vector<16x64xf32>
    %74 = vector.broadcast %58 : vector<16x1xf32> to vector<16x64xf32>
    %75 = arith.mulf %74, %73 : vector<16x64xf32>
    %76 = arith.addf %75, %71 : vector<16x64xf32>
    %c1_47 = arith.constant 1 : index
    %c0_48 = arith.constant 0 : index
    %c0_49 = arith.constant 0 : index
    %77 = vector.load %arg10[%c1_47, %c0_48, %c0_49] : memref<2x16x64xf32, #tpu.memory_space<vmem>>, vector<1x16x64xf32>
    %78 = vector.shape_cast %77 : vector<1x16x64xf32> to vector<16x64xf32>
    %79 = vector.shape_cast %76 : vector<16x64xf32> to vector<1x16x64xf32>
    tpu.vector_store %arg10[%c1_47, %c0_48, %c0_49], %79 {strides = array<i32>} : memref<2x16x64xf32, #tpu.memory_space<vmem>>, vector<1x16x64xf32>,
    %c1_50 = arith.constant 1 : index
    %c0_51 = arith.constant 0 : index
    %c0_52 = arith.constant 0 : index
    %80 = vector.load %arg8[%c1_50, %c0_51, %c0_52] : memref<2x16x1xf32, #tpu.memory_space<vmem>>, vector<1x16x1xf32>
    %81 = vector.shape_cast %80 : vector<1x16x1xf32> to vector<16x1xf32>
    %82 = vector.shape_cast %56 : vector<16x1xf32> to vector<1x16x1xf32>
    tpu.vector_store %arg8[%c1_50, %c0_51, %c0_52], %82 {strides = array<i32>} : memref<2x16x1xf32, #tpu.memory_space<vmem>>, vector<1x16x1xf32>,
    %c0_i32_53 = arith.constant 0 : i32
    %83 = arith.cmpi eq, %arg3, %c0_i32_53 : i32
    %84 = arith.extui %83 : i1 to i32
    %c0_i32_54 = arith.constant 0 : i32
    %85 = arith.cmpi ne, %84, %c0_i32_54 : i32
    scf.if %85 {
      %c0_55 = arith.constant 0 : index
      %c0_56 = arith.constant 0 : index
      %c0_57 = arith.constant 0 : index
      %86 = vector.load %arg10[%c0_55, %c0_56, %c0_57] : memref<2x16x64xf32, #tpu.memory_space<vmem>>, vector<1x16x64xf32>
      %87 = vector.shape_cast %86 : vector<1x16x64xf32> to vector<16x64xf32>
      %c0_58 = arith.constant 0 : index
      %c0_59 = arith.constant 0 : index
      %c0_60 = arith.constant 0 : index
      %88 = vector.load %arg9[%c0_58, %c0_59, %c0_60] : memref<2x16x1xf32, #tpu.memory_space<vmem>>, vector<1x16x1xf32>
      %89 = vector.shape_cast %88 : vector<1x16x1xf32> to vector<16x1xf32>
      %90 = tpu.reciprocal %89 {approx = true} : vector<16x1xf32> -> vector<16x1xf32>
      %91 = vector.broadcast %90 : vector<16x1xf32> to vector<16x64xf32>
      %92 = arith.mulf %87, %91 : vector<16x64xf32>
      %c1_61 = arith.constant 1 : index
      %c0_62 = arith.constant 0 : index
      %c0_63 = arith.constant 0 : index
      %93 = vector.load %arg10[%c1_61, %c0_62, %c0_63] : memref<2x16x64xf32, #tpu.memory_space<vmem>>, vector<1x16x64xf32>
      %94 = vector.shape_cast %93 : vector<1x16x64xf32> to vector<16x64xf32>
      %c1_64 = arith.constant 1 : index
      %c0_65 = arith.constant 0 : index
      %c0_66 = arith.constant 0 : index
      %95 = vector.load %arg9[%c1_64, %c0_65, %c0_66] : memref<2x16x1xf32, #tpu.memory_space<vmem>>, vector<1x16x1xf32>
      %96 = vector.shape_cast %95 : vector<1x16x1xf32> to vector<16x1xf32>
      %97 = tpu.reciprocal %96 {approx = true} : vector<16x1xf32> -> vector<16x1xf32>
      %98 = vector.broadcast %97 : vector<16x1xf32> to vector<16x64xf32>
      %99 = arith.mulf %94, %98 : vector<16x64xf32>
      %100 = tpu.concatenate %92, %99 in 1 : vector<16x64xf32>, vector<16x64xf32> -> vector<16x128xf32>
      %c0_67 = arith.constant 0 : index
      %c0_68 = arith.constant 0 : index
      %c0_69 = arith.constant 0 : index
      %101 = vector.load %arg7[%c0_67, %c0_68, %c0_69] : memref<1x16x128xf32, #tpu.memory_space<vmem>>, vector<1x16x128xf32>
      %102 = vector.shape_cast %101 : vector<1x16x128xf32> to vector<16x128xf32>
      %103 = vector.shape_cast %100 : vector<16x128xf32> to vector<1x16x128xf32>
      tpu.vector_store %arg7[%c0_67, %c0_68, %c0_69], %103 {strides = array<i32>} : memref<1x16x128xf32, #tpu.memory_space<vmem>>, vector<1x16x128xf32>,
    } else {
    }
    return
  }
  func.func @transform_0(%arg0: i32, %arg1: i32, %arg2: i32, %arg3: i32) -> (i32, i32, i32) {
    %c0_i32 = arith.constant 0 : i32
    %0 = arith.addi %c0_i32, %arg1 : i32
    %c0_i32_0 = arith.constant 0 : i32
    return %arg0, %arg2, %0 : i32, i32, i32
  }
  func.func @transform_1(%arg0: i32, %arg1: i32, %arg2: i32, %arg3: i32) -> (i32, i32, i32) {
    %c1_i32 = arith.constant 1 : i32
    %0 = arith.addi %c1_i32, %arg1 : i32
    %c0_i32 = arith.constant 0 : i32
    return %arg0, %arg3, %0 : i32, i32, i32
  }
  func.func @transform_2(%arg0: i32, %arg1: i32, %arg2: i32, %arg3: i32) -> (i32, i32, i32) {
    %c2_i32 = arith.constant 2 : i32
    %0 = arith.addi %c2_i32, %arg1 : i32
    %c0_i32 = arith.constant 0 : i32
    return %arg0, %arg3, %0 : i32, i32, i32
  }
  func.func @transform_3(%arg0: i32, %arg1: i32, %arg2: i32, %arg3: i32) -> (i32, i32, i32) {
    %c0_i32 = arith.constant 0 : i32
    return %arg0, %arg2, %arg1 : i32, i32, i32
  }
}

module attributes {stable_mosaic.version = 11 : i64} {
  func.func @_conv1x1_kernel(%arg0: i32, %arg1: i32, %arg2: memref<1x4x256xf32, #tpu.memory_space<vmem>>, %arg3: memref<4x4xf32, #tpu.memory_space<vmem>>, %arg4: memref<4x1xf32, #tpu.memory_space<vmem>>, %arg5: memref<1x4x256xf32, #tpu.memory_space<vmem>>) attributes {dimension_semantics = [#tpu.dimension_semantics<parallel>, #tpu.dimension_semantics<parallel>], iteration_bounds = array<i64: 2, 1>, scalar_prefetch = 0 : i64, scratch_operands = 0 : i64, tpu.core_type = #tpu.core_type<tc>, window_params = [{transform_indices = @transform_0, window_bounds = array<i64: 1, 4, 256>}, {pipeline_mode = #tpu.pipeline_mode<synchronous>, transform_indices = @transform_1, window_bounds = array<i64: 4, 4>}, {pipeline_mode = #tpu.pipeline_mode<synchronous>, transform_indices = @transform_2, window_bounds = array<i64: 4, 1>}, {transform_indices = @transform_3, window_bounds = array<i64: 1, 4, 256>}]} {
    %c0 = arith.constant 0 : index
    %c0_0 = arith.constant 0 : index
    %0 = vector.load %arg3[%c0, %c0_0] : memref<4x4xf32, #tpu.memory_space<vmem>>, vector<4x4xf32>
    %c0_1 = arith.constant 0 : index
    %c0_2 = arith.constant 0 : index
    %c0_3 = arith.constant 0 : index
    %1 = vector.load %arg2[%c0_1, %c0_2, %c0_3] : memref<1x4x256xf32, #tpu.memory_space<vmem>>, vector<1x4x256xf32>
    %2 = vector.shape_cast %1 : vector<1x4x256xf32> to vector<4x256xf32>
    %cst = arith.constant dense<0.000000e+00> : vector<4x256xf32>
    %3 = tpu.matmul %0, %2, %cst {dimension_numbers = #tpu.dot_dimension_numbers<[1], [0], [0], [1], [0, 0, 1, 1], [], []>} : vector<4x4xf32>, vector<4x256xf32>, vector<4x256xf32> -> vector<4x256xf32>
    %c0_4 = arith.constant 0 : index
    %c0_5 = arith.constant 0 : index
    %4 = vector.load %arg4[%c0_4, %c0_5] : memref<4x1xf32, #tpu.memory_space<vmem>>, vector<4x1xf32>
    %5 = vector.broadcast %4 : vector<4x1xf32> to vector<4x256xf32>
    %6 = arith.addf %3, %5 : vector<4x256xf32>
    %c0_6 = arith.constant 0 : index
    %c0_7 = arith.constant 0 : index
    %c0_8 = arith.constant 0 : index
    %7 = vector.load %arg5[%c0_6, %c0_7, %c0_8] : memref<1x4x256xf32, #tpu.memory_space<vmem>>, vector<1x4x256xf32>
    %8 = vector.shape_cast %7 : vector<1x4x256xf32> to vector<4x256xf32>
    %9 = vector.shape_cast %6 : vector<4x256xf32> to vector<1x4x256xf32>
    tpu.vector_store %arg5[%c0_6, %c0_7, %c0_8], %9 {strides = array<i32>} : memref<1x4x256xf32, #tpu.memory_space<vmem>>, vector<1x4x256xf32>,
    return
  }
  func.func @transform_0(%arg0: i32, %arg1: i32) -> (i32, i32, i32) {
    %c0_i32 = arith.constant 0 : i32
    %c0_i32_0 = arith.constant 0 : i32
    return %arg0, %c0_i32, %arg1 : i32, i32, i32
  }
  func.func @transform_1(%arg0: i32, %arg1: i32) -> (i32, i32) {
    %c0_i32 = arith.constant 0 : i32
    %c0_i32_0 = arith.constant 0 : i32
    %c0_i32_1 = arith.constant 0 : i32
    return %c0_i32, %c0_i32_0 : i32, i32
  }
  func.func @transform_2(%arg0: i32, %arg1: i32) -> (i32, i32) {
    %c0_i32 = arith.constant 0 : i32
    %c0_i32_0 = arith.constant 0 : i32
    %c0_i32_1 = arith.constant 0 : i32
    return %c0_i32, %c0_i32_0 : i32, i32
  }
  func.func @transform_3(%arg0: i32, %arg1: i32) -> (i32, i32, i32) {
    %c0_i32 = arith.constant 0 : i32
    %c0_i32_0 = arith.constant 0 : i32
    return %arg0, %c0_i32, %arg1 : i32, i32, i32
  }
}

</mosaic_0001>

<bundles_post_ra>
// kernel: hybrid_conditioner_forward.7
= control target key start
LH: loop header
LB: loop body
LE: loop exit
PB: predicated region body
PF: predicated region fallthrough
CT: control target
= control target key end

     0   :  { %8 = vsyncpa [#allocation3], 0  ;;  %s601_s0 = inlined_call_operand.vmem [shape: f32[32,128], index: 0, kind: input, shape index: {}]   ;;  %s602_s1 = inlined_call_operand.vmem [shape: f32[32,128], index: 1, kind: input, shape index: {}]   ;;  %s603_s2 = inlined_call_operand.vmem [shape: f32[1,32], index: 2, kind: input, shape index: {}]   ;;  %s604_s3 = inlined_call_operand.hbm [shape: f32[32,32], index: 3, kind: output, shape index: {}]  }
   0x1   :  { %10 = vsyncpa [#allocation3 + $0x1], 0  ;;  %s486_s12 = smov 0   ;;  %s488_s13 = smov 0  }
   0x2   :  { %s490_s14 = smov 0   ;;  %s492_s15 = smov 0  }
   0x3 LB: > { %s507_s16 = sadd.s32 4294967295, %s460_s15   ;;  %s323_s17 = sadd.s32 4294967294, %s460_s15   ;;  %s460_s15 = sphi %s492_s15, %s610_s15   ;;  %s456_s14 = sphi %s490_s14, %s609_s14   ;;  %s452_s13 = sphi %s488_s13, %s608_s13   ;;  %s448_s12 = sphi %s486_s12, %s607_s12  }
   0x4   : > { %s511_s18 = sadd.s32 1, %s460_s15   ;;  %s91_s19 = sadd.s32 1, %s456_s14 }
   0x5   : > { %s88_s20 = ssub.s32 %s460_s15, %s511_s18  ;;  %p101_p0 = scmp.ne.s32.totalorder %s456_s14, %s452_s13 }
   0x6   : > { %p89_p1 = scmp.eq.s32.totalorder %s88_s20, 0  ;;  %p102_p2 = scmp.eq.s32.totalorder %s507_s16, 3 }
   0x7   : > { %p107_p3 = scmp.ne.s32.totalorder %s452_s13, %s448_s12  ;;  %p108_p4 = scmp.eq.s32.totalorder %s323_s17, 3 }
   0x8   : > { %s522_s21 = scalar_select %p89_p1, %s456_s14, %s91_s19  }
   0x9   : > { %p524_p5 = por %p102_p2, %p101_p0  ;;  %p528_p6 = por %p108_p4, %p107_p3 }
   0xa   : > { %p326_p7 = scmp.ge.s32.totalorder %s460_s15, 1  ;;  %p139_p8 = scmp.lt.s32.totalorder %s460_s15, 5 }
   0xc   : > { %p140_p9 = pnand %p326_p7, %p139_p8 }
   0xd   : > { %v167_v0 = vld [vmem:[%s602_s1] sm:$0xff] (!%p140_p9)  ;;  %v168_v1 = vld [vmem:[%s602_s1 + $0x8] sm:$0xff] (!%p140_p9)  ;;  %v462_v2 = vmov (!%p140_p9), 0.0|0.0   ;;  %vm463_vm0 = vmmov (!%p140_p9), 0   ;;  %v464_v4 = vmov (!%p140_p9), 0.0   ;;  %p162_p10 = scmp.lt.s32.totalorder (!%p140_p9), %s507_s16, 3 }
   0xe   : > { %143 = sbr.rel (%p140_p9) target bundleno = 259 (0x103), region = 32  ;;  %350 = vmatprep.subr.bf16.mxu0 (!%p140_p9), %v462_v2  ;;  %v351_v3 = vpack.c.bf16 (!%p140_p9), %v168_v1, %v167_v0  ;;  %347 = vmatprep.mubr.msk.f32.mxu0 (!%p140_p9), %vm463_vm0, %v464_v4  ;;  %v169_v5 = vld [vmem:[%s602_s1 + $0x10] sm:$0xff] (!%p140_p9)  ;;  %v170_v6 = vld [vmem:[%s602_s1 + $0x18] sm:$0xff] (!%p140_p9)  ;;  %s159_s10 = sand.u32 (!%p140_p9), 1, %s452_s13   ;;  %v329_v9 = vld [vmem:[%s603_s2] ss:$0 sm:$0xff] (!%p140_p9) }
   0xf   : > { %v354_v7 = vpack.c.bf16 (!%p140_p9), %v170_v6, %v169_v5  ;;  %s327_s11 = sshll.u32 (!%p140_p9), %s159_s10, 3  ;;  %s331_s20 = sshll.u32 (!%p140_p9), %s507_s16, 7  ;;  %vm248_vm1 = vcmask (!%p140_p9), 261120  }
  0x10   : > { %352 = vmatpush3.bf16.xpose.msra.mxu0 (!%p140_p9), %v351_v3  ;;  %s161_s24 = scalar_lea.vmem (!%p140_p9), [#allocation2], %s327_s11  ;;  %s559_s28 = scalar_lea.hbm (!%p140_p9), %s604_s3, %s331_s20 }
  0x11   : > { %353 = vmatprep.subr.bf16.mxu0 (!%p140_p9), %v462_v2  ;;  %s264_s25 = sshll.u32 (!%p140_p9), %s161_s24, 4  ;;  %s251_s29 = scalar_lea.sflag (!%p140_p9), [#allocation3], %s159_s10  ;;  %s561_s25 = int_to_ptr.vmem [resolvable:$true] %s264_s25 }
  0x12   : > { %s398_s30 = scalar_lea.vmem (!%p140_p9), %s561_s25, 128 }
  0x13   : > { %p399_p11 = scmp.ne.s32.totalorder (!%p140_p9), %s561_s25, %s398_s30 }
  0x15   : > { %s163_s5 = scalar_select %p162_p10, %s507_s16, 3 }
  0x16   : > { %p400_p12 = pnand %p399_p11, %p524_p5  ;;  %s465_s16 = smov [#allocation2]  }
  0x17   : > { %s328_s6 = sshll.u32 %s163_s5, 3  ;;  %s402_s4 = sshll.u32 %s465_s16, 4  ;;  %s403_s4 = int_to_ptr.vmem [resolvable:$false] %s402_s4 }
  0x18   : > { %355 = vmatpush3.bf16.xpose.msra.mxu0 %v354_v7  ;;  %s165_s9 = scalar_lea.vmem %s601_s0, %s328_s6  ;;  %p401_p13 = pneg %p400_p12 }
  0x19   : > { %v166_v8 = vld [vmem:[%s165_s9] sm:$0xff]  ;;  %s404_s5 = scalar_lea.vmem %s403_s4, 256  ;;  %p405_p0 = scmp.lt.s32.totalorder %s561_s25, %s403_s4 }
  0x1a   : > { %p406_p1 = scmp.lt.s32.totalorder %s404_s5, %s398_s30 }
  0x1c   : > { %p407_p2 = por %p406_p1, %p405_p0 }
  0x1e   : > { %p408_p3 = pnand %p407_p2, %p401_p13 }
  0x1f   : > { %348 = vmatmul.mubr.f32.vlgmr.msra.gmra.mrb[0].mxu0 %v166_v8 }
  0xf2   : > { %v244_v10 = vpop.f32.mrb[0].mxu0 }
  0xf3   : > { %v245_v11 = vadd.f32 %v329_v9, %v244_v10  ;;  %v349_v12 = vpop.f32.mrb[1].mxu0 }
  0xf5   : > { %249 = vst.msk [vmem:[%s161_s24] sm:$0xff] %vm248_vm1, %v245_v11 }
  0xf6   : > { %411 = shalt.err (!%p408_p3)
}
  0xf7   : > { %s412_s6 = scalar_lea.hbm %s559_s28, 128  ;;  %s416_s9 = scalar_lea.hbm %s604_s3, 512 }
  0xf8   : > { %p413_p4 = scmp.ne.s32.totalorder %s559_s28, %s412_s6  ;;  %p417_p9 = scmp.lt.u32.totalorder %s559_s28, %s604_s3 }
  0xf9   : > { %p418_p10 = scmp.lt.u32.totalorder %s416_s9, %s412_s6  ;;  %p420_p12 = scmp.lt.u32.totalorder %s412_s6, %s559_s28 }
  0xfa   : > { %p414_p7 = pnand %p413_p4, %p524_p5 }
  0xfb   : > { %p419_p11 = por %p418_p10, %p417_p9 }
  0xfc   : > { %p415_p8 = pneg %p414_p7 }
  0xfd   : > { %p421_p13 = por %p420_p12, %p419_p11 }
  0xff   : > { %p422_p0 = pnand %p421_p13, %p415_p8 }
 0x101   : > { %425 = shalt.err (!%p422_p0)
}
 0x102   : > { %356 = dma.vmem_to_hbm [thread:$0]  (%p524_p5), %s561_s25, 128, %s559_s28, %s251_s29  }
 0x103 PF: > { %p362_p1 = scmp.ge.s32.totalorder %s460_s15, 2  ;;  %s276_s17 = sand.u32 1, %s448_s12  }
 0x104   : > { %s277_s19 = scalar_lea.sflag [#allocation3], %s276_s17 }
 0x105   : > { %p359_p2 = pnand %p362_p1, %p528_p6 }
 0x107   : > { %443 = dma.done.wait (!%p359_p2), %s277_s19, 128  }
 0x108   : > { %445 = vsyncadd (!%p359_p2), %s277_s19, 4294967168  ;;  %p13_p3 = scmp.ge.s32.totalorder %s511_s18, 6   ;;  %s607_s12 = smov %s452_s13 }
 0x109   : > { %s608_s13 = smov %s456_s14  ;;  %s609_s14 = smov %s522_s21 }
 0x10a   : > { %s610_s15 = smov %s511_s18  ;;  %15 = sbr.rel (!%p13_p3) target bundleno = 3 (0x3), region = 67 }
 0x111   :  { %282 = vsyncpa [#allocation3], 1 }
 0x112   :  { %284 = vsyncpa [#allocation3 + $0x1], 1 }

// kernel: hybrid_conditioner_forward.5
= control target key start
LH: loop header
LB: loop body
LE: loop exit
PB: predicated region body
PF: predicated region fallthrough
CT: control target
= control target key end

     0   :  { %s800_s9 = smov 0   ;;  %s1045_s0 = inlined_call_operand.vmem [shape: f32[32,32], index: 0, kind: input, shape index: {}]   ;;  %s1046_s1 = inlined_call_operand.vmem [shape: f32[384,32], index: 1, kind: input, shape index: {}]   ;;  %s1047_s2 = inlined_call_operand.vmem [shape: f32[32,384], index: 2, kind: output, shape index: {}]  }
   0x1 LB: > { %s537_s10 = sadd.s32 4294967295, %s780_s9   ;;  %p541_p0 = scmp.ge.s32.totalorder %s780_s9, 1  ;;  %s780_s9 = sphi %s800_s9, %s12_s9  }
   0x2   : > { %p111_p1 = scmp.lt.s32.totalorder %s780_s9, 5 }
   0x4   : > { %p112_p2 = pnand %p541_p0, %p111_p1 }
   0x5   : > { %v158_v0 = vld [vmem:[%s1046_s1 + $0x80] sm:$0xff] (!%p112_p2)  ;;  %v159_v1 = vld [vmem:[%s1046_s1 + $0x88] sm:$0xff] (!%p112_p2)  ;;  %vm190_vm0 = vcmask (!%p112_p2), 261120   ;;  %v782_v5 = vmov (!%p112_p2), 0.0|0.0   ;;  %v160_v10 = vld [vmem:[%s1046_s1 + $0x90] sm:$0xff] (!%p112_p2)  ;;  %p841_p3 = scmp.lt.s32.totalorder (!%p112_p2), %s537_s10, 3 }
   0x6   : > { %115 = sbr.rel (%p112_p2) target bundleno = 286 (0x11e), region = 28  ;;  %v142_v2 = vld [vmem:[%s1046_s1] sm:$0xff] (!%p112_p2)  ;;  %v682_v3 = vpack.c.bf16 (!%p112_p2), %v159_v1, %v158_v0  ;;  %vm819_vm1 = vmpackc.low (!%p112_p2), %vm190_vm0, %vm190_vm0  ;;  %730 = vmatprep.subr.bf16.mxu1 (!%p112_p2), %v782_v5  ;;  %v143_v6 = vld [vmem:[%s1046_s1 + $0x8] sm:$0xff] (!%p112_p2)  ;;  %vm783_vm2 = vmmov (!%p112_p2), 0   ;;  %v784_v12 = vmov (!%p112_p2), 0.0  }
   0x7   : > { %v174_v7 = vld [vmem:[%s1046_s1 + $0x100] sm:$0xff] (!%p112_p2)  ;;  %v685_v8 = vpack.c.bf16 (!%p112_p2), %v143_v6, %v142_v2  ;;  %v175_v9 = vld [vmem:[%s1046_s1 + $0x108] sm:$0xff] (!%p112_p2)  ;;  %v161_v11 = vld [vmem:[%s1046_s1 + $0x98] sm:$0xff] (!%p112_p2)  ;;  %679 = vmatprep.mubr.msk.f32.mxu1 (!%p112_p2), %vm783_vm2, %v784_v12 }
   0x8   : > { %684 = vmatprep.subr.msk.bf16.mxu0 (!%p112_p2), %vm819_vm1, %v682_v3  ;;  %v731_v13 = vpack.c.bf16 (!%p112_p2), %v175_v9, %v174_v7  ;;  %v688_v14 = vpack.c.bf16 (!%p112_p2), %v161_v11, %v160_v10  ;;  %v144_v15 = vld [vmem:[%s1046_s1 + $0x10] sm:$0xff] (!%p112_p2)  ;;  %v145_v16 = vld [vmem:[%s1046_s1 + $0x18] sm:$0xff] (!%p112_p2)  ;;  %v162_v19 = vld [vmem:[%s1046_s1 + $0xa0] sm:$0xff] (!%p112_p2) }
   0x9   : > { %687 = vmatpush3.bf16.xpose.msk.msra.mxu0 (!%p112_p2), %vm819_vm1, %v685_v8  ;;  %v176_v17 = vld [vmem:[%s1046_s1 + $0x110] sm:$0xff] (!%p112_p2)  ;;  %v177_v18 = vld [vmem:[%s1046_s1 + $0x118] sm:$0xff] (!%p112_p2)  ;;  %v163_v20 = vld [vmem:[%s1046_s1 + $0xa8] sm:$0xff] (!%p112_p2)  ;;  %v691_v21 = vpack.c.bf16 (!%p112_p2), %v145_v16, %v144_v15 }
   0xa   : > { %733 = vmatpush3.bf16.xpose.msk.msra.mxu1 (!%p112_p2), %vm819_vm1, %v731_v13  ;;  %690 = vmatprep.subr.msk.bf16.mxu0 (!%p112_p2), %vm819_vm1, %v688_v14  ;;  %v735_v22 = vpack.c.bf16 (!%p112_p2), %v177_v18, %v176_v17  ;;  %v694_v23 = vpack.c.bf16 (!%p112_p2), %v163_v20, %v162_v19  ;;  %v146_v24 = vld [vmem:[%s1046_s1 + $0x20] sm:$0xff] (!%p112_p2)  ;;  %v147_v25 = vld [vmem:[%s1046_s1 + $0x28] sm:$0xff] (!%p112_p2)  ;;  %v164_v28 = vld [vmem:[%s1046_s1 + $0xb0] sm:$0xff] (!%p112_p2) }
   0xb   : > { %734 = vmatprep.subr.bf16.mxu1 (!%p112_p2), %v782_v5  ;;  %v178_v26 = vld [vmem:[%s1046_s1 + $0x120] sm:$0xff] (!%p112_p2)  ;;  %v179_v27 = vld [vmem:[%s1046_s1 + $0x128] sm:$0xff] (!%p112_p2)  ;;  %v165_v29 = vld [vmem:[%s1046_s1 + $0xb8] sm:$0xff] (!%p112_p2)  ;;  %v697_v30 = vpack.c.bf16 (!%p112_p2), %v147_v25, %v146_v24 }
   0xc   : > { %v739_v32 = vpack.c.bf16 (!%p112_p2), %v179_v27, %v178_v26  ;;  %v700_v33 = vpack.c.bf16 (!%p112_p2), %v165_v29, %v164_v28  ;;  %v148_v34 = vld [vmem:[%s1046_s1 + $0x30] sm:$0xff] (!%p112_p2)  ;;  %v149_v35 = vld [vmem:[%s1046_s1 + $0x38] sm:$0xff] (!%p112_p2)  ;;  %v166_v38 = vld [vmem:[%s1046_s1 + $0xc0] sm:$0xff] (!%p112_p2) }
   0xd   : > { %s1052_s10 = smov (!%p841_p3, %s537_s10), 3  ;;  %v180_v36 = vld [vmem:[%s1046_s1 + $0x130] sm:$0xff]  ;;  %v181_v37 = vld [vmem:[%s1046_s1 + $0x138] sm:$0xff]  ;;  %v167_v39 = vld [vmem:[%s1046_s1 + $0xc8] sm:$0xff]  ;;  %v703_v40 = vpack.c.bf16 %v149_v35, %v148_v34 }
   0xe   : > { %s542_s14 = sshll.u32 %s1052_s10, 3  ;;  %v743_v41 = vpack.c.bf16 %v181_v37, %v180_v36  ;;  %v706_v42 = vpack.c.bf16 %v167_v39, %v166_v38  ;;  %v150_v43 = vld [vmem:[%s1046_s1 + $0x40] sm:$0xff]  ;;  %v151_v44 = vld [vmem:[%s1046_s1 + $0x48] sm:$0xff]  ;;  %v168_v47 = vld [vmem:[%s1046_s1 + $0xd0] sm:$0xff]  ;;  %s762_s6 = smul.u32 24, %s1052_s10 }
   0xf   : > { %s135_s23 = scalar_lea.vmem %s1045_s0, %s542_s14  ;;  %v182_v45 = vld [vmem:[%s1046_s1 + $0x140] sm:$0xff]  ;;  %v183_v46 = vld [vmem:[%s1046_s1 + $0x148] sm:$0xff]  ;;  %v169_v48 = vld [vmem:[%s1046_s1 + $0xd8] sm:$0xff]  ;;  %v709_v49 = vpack.c.bf16 %v151_v44, %v150_v43 }
  0x10   : > { %v907_v31 = vld [vmem:[%s135_s23] sm:$0xff]  ;;  %v747_v50 = vpack.c.bf16 %v183_v46, %v182_v45  ;;  %v712_v51 = vpack.c.bf16 %v169_v48, %v168_v47  ;;  %v152_v52 = vld [vmem:[%s1046_s1 + $0x50] sm:$0xff]  ;;  %v153_v53 = vld [vmem:[%s1046_s1 + $0x58] sm:$0xff]  ;;  %s140_s11 = scalar_lea.vmem %s1047_s2, %s762_s6 }
  0x11   : > { %693 = vmatpush3.bf16.xpose.msk.msra.mxu0 %vm819_vm1, %v691_v21  ;;  %628 = vmatprep.mubr.msk.f32.mxu0 %vm190_vm0, %v907_v31  ;;  %v184_v54 = vld [vmem:[%s1046_s1 + $0x150] sm:$0xff]  ;;  %v185_v55 = vld [vmem:[%s1046_s1 + $0x158] sm:$0xff]  ;;  %v170_v56 = vld [vmem:[%s1046_s1 + $0xe0] sm:$0xff]  ;;  %v715_v58 = vpack.c.bf16 %v153_v53, %v152_v52 }
  0x12   : > { %737 = vmatpush3.bf16.xpose.msk.msra.mxu1 %vm819_vm1, %v735_v22  ;;  %696 = vmatprep.subr.msk.bf16.mxu0 %vm819_vm1, %v694_v23  ;;  %v171_v57 = vld [vmem:[%s1046_s1 + $0xe8] sm:$0xff]  ;;  %v751_v59 = vpack.c.bf16 %v185_v55, %v184_v54  ;;  %v154_v61 = vld [vmem:[%s1046_s1 + $0x60] sm:$0xff]  ;;  %v172_v1 = vld [vmem:[%s1046_s1 + $0xf0] sm:$0xff] }
  0x13   : > { %738 = vmatprep.subr.bf16.mxu1 %v782_v5  ;;  %v718_v60 = vpack.c.bf16 %v171_v57, %v170_v56  ;;  %v155_v62 = vld [vmem:[%s1046_s1 + $0x68] sm:$0xff]  ;;  %v186_v63 = vld [vmem:[%s1046_s1 + $0x160] sm:$0xff]  ;;  %v173_v2 = vld [vmem:[%s1046_s1 + $0xf8] sm:$0xff] }
  0x14   : > { %v187_v0 = vld [vmem:[%s1046_s1 + $0x168] sm:$0xff]  ;;  %v721_v3 = vpack.c.bf16 %v155_v62, %v154_v61  ;;  %v724_v7 = vpack.c.bf16 %v173_v2, %v172_v1  ;;  %v156_v8 = vld [vmem:[%s1046_s1 + $0x70] sm:$0xff]  ;;  %v157_v9 = vld [vmem:[%s1046_s1 + $0x78] sm:$0xff] }
  0x15   : > { %v755_v6 = vpack.c.bf16 %v187_v0, %v186_v63  ;;  %v188_v10 = vld [vmem:[%s1046_s1 + $0x170] sm:$0xff]  ;;  %v189_v11 = vld [vmem:[%s1046_s1 + $0x178] sm:$0xff]  ;;  %v727_v12 = vpack.c.bf16 %v157_v9, %v156_v8 }
  0x16   : > { %v759_v13 = vpack.c.bf16 %v189_v11, %v188_v10 }
  0x19   : > { %699 = vmatpush3.bf16.xpose.msk.msra.mxu0 %vm819_vm1, %v697_v30 }
  0x1a   : > { %741 = vmatpush3.bf16.xpose.msk.msra.mxu1 %vm819_vm1, %v739_v32  ;;  %702 = vmatprep.subr.msk.bf16.mxu0 %vm819_vm1, %v700_v33 }
  0x1b   : > { %742 = vmatprep.subr.bf16.mxu1 %v782_v5 }
  0x21   : > { %705 = vmatpush3.bf16.xpose.msk.msra.mxu0 %vm819_vm1, %v703_v40 }
  0x22   : > { %745 = vmatpush3.bf16.xpose.msk.msra.mxu1 %vm819_vm1, %v743_v41  ;;  %708 = vmatprep.subr.msk.bf16.mxu0 %vm819_vm1, %v706_v42 }
  0x23   : > { %746 = vmatprep.subr.bf16.mxu1 %v782_v5 }
  0x29   : > { %711 = vmatpush3.bf16.xpose.msk.msra.mxu0 %vm819_vm1, %v709_v49 }
  0x2a   : > { %749 = vmatpush3.bf16.xpose.msk.msra.mxu1 %vm819_vm1, %v747_v50  ;;  %714 = vmatprep.subr.msk.bf16.mxu0 %vm819_vm1, %v712_v51 }
  0x2b   : > { %750 = vmatprep.subr.bf16.mxu1 %v782_v5 }
  0x31   : > { %717 = vmatpush3.bf16.xpose.msk.msra.mxu0 %vm819_vm1, %v715_v58 }
  0x32   : > { %753 = vmatpush3.bf16.xpose.msk.msra.mxu1 %vm819_vm1, %v751_v59  ;;  %720 = vmatprep.subr.msk.bf16.mxu0 %vm819_vm1, %v718_v60 }
  0x33   : > { %754 = vmatprep.subr.bf16.mxu1 %v782_v5 }
  0x39   : > { %723 = vmatpush3.bf16.xpose.msk.msra.mxu0 %vm819_vm1, %v721_v3 }
  0x3a   : > { %757 = vmatpush3.bf16.xpose.msk.msra.mxu1 %vm819_vm1, %v755_v6  ;;  %726 = vmatprep.subr.msk.bf16.mxu0 %vm819_vm1, %v724_v7 }
  0x3b   : > { %758 = vmatprep.subr.bf16.mxu1 %v782_v5 }
  0x41   : > { %729 = vmatpush3.bf16.xpose.msk.msra.mxu0 %vm819_vm1, %v727_v12 }
  0x42   : > { %761 = vmatpush3.bf16.xpose.msk.msra.mxu1 %vm819_vm1, %v759_v13 }
  0x48   : > { %629 = vmatmul.mubr.msk.f32.vlgmr.msra.gmra.mrb[0].mxu0 %vm190_vm0, %v907_v31 }
  0x49   : > { %680 = vmatmul.mubr.msk.f32.vlgmr.msra.gmra.mrb[0].mxu1 %vm190_vm0, %v907_v31 }
 0x11b   : > { %v404_v5 = vpop.f32.mrb[0].mxu0 }
 0x11c   : > { %479 = vst [vmem:[%s140_s11] sm:$0xff] %v404_v5  ;;  %v475_v14 = vpop.f32.mrb[0].mxu1  ;;  %v406_v15 = vpop.f32.mrb[1].mxu0 }
 0x11d   : > { %481 = vst [vmem:[%s140_s11 + $0x10] sm:$0xff] %v475_v14  ;;  %480 = vst [vmem:[%s140_s11 + $0x8] sm:$0xff] %v406_v15  ;;  %v681_v16 = vpop.f32.mrb[1].mxu1 }
 0x11e PF: > { %s12_s9 = sadd.s32 1, %s780_s9  }
 0x11f   : > { %p9_p4 = scmp.ge.s32.totalorder %s12_s9, 6  }
 0x121   :  { %11 = sbr.rel (!%p9_p4) target bundleno = 1 (0x1), region = 58 }

// kernel: hybrid_conditioner_forward.6
= control target key start
LH: loop header
LB: loop body
LE: loop exit
PB: predicated region body
PF: predicated region fallthrough
CT: control target
= control target key end

     0   :  { %s1370_s12 = smov 0   ;;  %s1372_s13 = smov 0   ;;  %s1553_s0 = inlined_call_operand.vmem [shape: f32[2,16,384], index: 0, kind: input, shape index: {}, may-alias: {0,1,2}]   ;;  %s1554_s1 = inlined_call_operand.vmem [shape: f32[2,16,384], index: 1, kind: input, shape index: {}, may-alias: {0,1,2}]   ;;  %s1555_s2 = inlined_call_operand.vmem [shape: f32[2,16,384], index: 2, kind: input, shape index: {}, may-alias: {0,1,2}]   ;;  %s1556_s3 = inlined_call_operand.vmem [shape: f32[2,16,128], index: 3, kind: output, shape index: {}]  }
   0x1   :  { %s1374_s14 = smov 0   ;;  %s1376_s15 = smov 0  }
   0x2   :  { %s1378_s16 = smov 0  }
   0x3 LB: > { %s39_s17 = sadd.s32 1, %s1340_s15  ;;  %p57_p1 = scmp.ne.s32.totalorder %s1332_s13, %s1328_s12  ;;  %s1344_s16 = sphi %s1378_s16, %s13_s16   ;;  %s1340_s15 = sphi %s1376_s15, %s1563_s15   ;;  %s1336_s14 = sphi %s1374_s14, %s1562_s14   ;;  %s1332_s13 = sphi %s1372_s13, %s1561_s13   ;;  %s1328_s12 = sphi %s1370_s12, %s1560_s12  }
   0x4   : > { %p41_p0 = scmp.ge.s32.totalorder %s39_s17, 2  ;;  %p58_p2 = scmp.eq.s32.totalorder %s1344_s16, 0 }
   0x5   : > { %s50_s20 = sadd.s32 1, %s1332_s13  ;;  %p1129_p5 = scmp.ge.s32.totalorder %s1344_s16, 2 }
   0x6   : > { %s1565_s17 = smov (%p41_p0, %s39_s17), 0  ;;  %p1401_p3 = por %p58_p2, %p57_p1 }
   0x7   : > { %s43_s19 = ssub.s32 %s1340_s15, %s1565_s17  ;;  %177 = sbr.rel (%p1129_p5) target bundleno = 35 (0x23), region = 16 }
   0x8   : > { %p48_p4 = scmp.eq.s32.totalorder %s43_s19, 0 }
   0xa   : > { %s1409_s21 = scalar_select %p48_p4, %s1332_s13, %s50_s20  }
   0xe   : > { %180 = sbr.rel (!%p1401_p3) target bundleno = 21 (0x15), region = 20  ;;  %s182_s22 = sand.u32 (%p1401_p3), 1, %s1332_s13  }
   0xf   : > { %s1225_s23 = smul.u32 (%p1401_p3), 48, %s1340_s15  ;;  %s1130_s24 = sshll.u32 (%p1401_p3), %s182_s22, 4 }
  0x10   : > { %s184_s28 = scalar_lea.vmem (%p1401_p3), [#allocation5], %s1130_s24 }
  0x11   : > { %s191_s27 = scalar_lea.vmem (%p1401_p3), %s1553_s0, %s1225_s23 }
  0x12   : > { %v221_v0 = vld [vmem:[%s191_s27] sm:$0xff] (%p1401_p3)  ;;  %v223_v1 = vld [vmem:[%s191_s27 + $0x18] sm:$0xff] (%p1401_p3) }
  0x13   : > { %222 = vst [vmem:[%s184_s28] sm:$0xff] (%p1401_p3), %v221_v0  ;;  %224 = vst [vmem:[%s184_s28 + $0x8] sm:$0xff] (%p1401_p3), %v223_v1 }
  0x15 PF: > { %230 = sbr.rel (!%p1401_p3) target bundleno = 28 (0x1c), region = 58  ;;  %s232_s29 = sand.u32 (%p1401_p3), 1, %s1332_s13  }
  0x16   : > { %s1133_s30 = smul.u32 (%p1401_p3), 48, %s1340_s15  ;;  %s1132_s4 = sshll.u32 (%p1401_p3), %s232_s29, 4 }
  0x17   : > { %s234_s8 = scalar_lea.vmem (%p1401_p3), [#allocation6], %s1132_s4 }
  0x18   : > { %s1024_s7 = scalar_lea.vmem (%p1401_p3), %s1554_s1, %s1133_s30 }
  0x19   : > { %v1134_v2 = vld [vmem:[%s1024_s7 + $0x8] sm:$0xff] (%p1401_p3)  ;;  %v1135_v3 = vld [vmem:[%s1024_s7 + $0x20] sm:$0xff] (%p1401_p3) }
  0x1a   : > { %273 = vst [vmem:[%s234_s8] sm:$0xff] (%p1401_p3), %v1134_v2  ;;  %275 = vst [vmem:[%s234_s8 + $0x8] sm:$0xff] (%p1401_p3), %v1135_v3 }
  0x1c PF: > { %281 = sbr.rel (!%p1401_p3) target bundleno = 35 (0x23), region = 96  ;;  %s283_s9 = sand.u32 (%p1401_p3), 1, %s1332_s13  }
  0x1d   : > { %s1137_s10 = smul.u32 (%p1401_p3), 48, %s1340_s15  ;;  %s1136_s11 = sshll.u32 (%p1401_p3), %s283_s9, 4 }
  0x1e   : > { %s285_s23 = scalar_lea.vmem (%p1401_p3), [#allocation7], %s1136_s11 }
  0x1f   : > { %s1033_s22 = scalar_lea.vmem (%p1401_p3), %s1555_s2, %s1137_s10 }
  0x20   : > { %v1138_v4 = vld [vmem:[%s1033_s22 + $0x10] sm:$0xff] (%p1401_p3)  ;;  %v1139_v5 = vld [vmem:[%s1033_s22 + $0x28] sm:$0xff] (%p1401_p3) }
  0x21   : > { %324 = vst [vmem:[%s285_s23] sm:$0xff] (%p1401_p3), %v1138_v4  ;;  %326 = vst [vmem:[%s285_s23 + $0x8] sm:$0xff] (%p1401_p3), %v1139_v5 }
  0x23 PF: > { %p1140_p6 = scmp.ge.s32.totalorder %s1344_s16, 1  ;;  %p331_p7 = scmp.lt.s32.totalorder %s1344_s16, 3 }
  0x25   : > { %p332_p8 = pnand %p1140_p6, %p331_p7 }
  0x26   : > { %s338_s18 = sand.u32 (!%p332_p8), 1, %s1328_s12   ;;  %vm421_vm0 = vcmask (!%p332_p8), 523264   ;;  %vm412_vm2 = vcmask (!%p332_p8), 7168   ;;  %v1346_v13 = vmov (!%p332_p8), -inf   ;;  %vm524_vm3 = vcmask (!%p332_p8), 130048   ;;  %s1349_s12 = smov (!%p332_p8), 64  }
  0x27   : > { %335 = sbr.rel (%p332_p8) target bundleno = 1481 (0x5c9), region = 134  ;;  %s1436_s24 = sshll.u32 (!%p332_p8), %s338_s18, 4  ;;  %vm1440_vm1 = vmpackc.low (!%p332_p8), %vm421_vm0, %vm421_vm0  ;;  %413 = vst.msk [vmem:[#allocation2] sm:$0xff] (!%p332_p8), %vm412_vm2, %v1346_v13  ;;  %v1347_v20 = vmov (!%p332_p8), 0   ;;  %v1348_v21 = vmov (!%p332_p8), 0.0  }
  0x28   : > { %s347_s25 = scalar_lea.vmem (!%p332_p8), [#allocation6], %s1436_s24  ;;  %s340_s26 = scalar_lea.vmem (!%p332_p8), [#allocation5], %s1436_s24  ;;  %414 = vst.msk [vmem:[#allocation2 + $0x8] sm:$0xff] (!%p332_p8), %vm412_vm2, %v1346_v13  ;;  %415 = vst.msk [vmem:[#allocation2 + $0x10] sm:$0xff] (!%p332_p8), %vm412_vm2, %v1346_v13  ;;  %1270 = vset.pattern.permute.xlu1 (!%p332_p8), %v1347_v20  ;;  %1276 = vset.pattern.permute.xlu0 (!%p332_p8), %v1347_v20 }
  0x29   : > { %v428_v7 = vld [vmem:[%s347_s25] sm:$0xff] (!%p332_p8)  ;;  %v429_v8 = vld [vmem:[%s347_s25 + $0x8] sm:$0xff] (!%p332_p8)  ;;  %416 = vst.msk [vmem:[#allocation2 + $0x18] sm:$0xff] (!%p332_p8), %vm412_vm2, %v1346_v13  ;;  %420 = vst.msk [vmem:[#allocation3 + $0x18] sm:$0xff] (!%p332_p8), %vm412_vm2, %v1348_v21  ;;  %s354_s27 = scalar_lea.vmem (!%p332_p8), [#allocation7], %s1436_s24  ;;  %p396_p9 = scmp.lt.s32.totalorder (!%p332_p8), %s1336_s14, 1 }
  0x2a   : > { %v426_v9 = vld [vmem:[%s340_s26] sm:$0xff] (!%p332_p8)  ;;  %v1271_v10 = vpack.i.bf16 (!%p332_p8), %v429_v8, %v428_v7  ;;  %v1205_v11 = vpack.c.bf16 (!%p332_p8), %v429_v8, %v428_v7  ;;  %v427_v12 = vld [vmem:[%s340_s26 + $0x8] sm:$0xff] (!%p332_p8)  ;;  %417 = vst.msk [vmem:[#allocation3] sm:$0xff] (!%p332_p8), %vm412_vm2, %v1348_v21  ;;  %418 = vst.msk [vmem:[#allocation3 + $0x8] sm:$0xff] (!%p332_p8), %vm412_vm2, %v1348_v21 }
  0x2b   : > { %1181 = vmatprep.mubr.msk.f32.mxu0 (!%p332_p8), %vm421_vm0, %v426_v9  ;;  %419 = vst.msk [vmem:[#allocation3 + $0x10] sm:$0xff] (!%p332_p8), %vm412_vm2, %v1348_v21  ;;  %v430_v30 = vld [vmem:[%s354_s27] sm:$0xff] (!%p332_p8)  ;;  %v431_v31 = vld [vmem:[%s354_s27 + $0x8] sm:$0xff] (!%p332_p8) }
  0x2c   : > { %1207 = vmatprep.subr.msk.bf16.mxu0 (!%p332_p8), %vm1440_vm1, %v1205_v11  ;;  %422 = vst.msk [vmem:[#allocation4] sm:$0xff] (!%p332_p8), %vm421_vm0, %v1348_v21  ;;  %423 = vst.msk [vmem:[#allocation4 + $0x8] sm:$0xff] (!%p332_p8), %vm421_vm0, %v1348_v21  ;;  %v1211_v32 = vpack.c.bf16 (!%p332_p8), %v431_v31, %v430_v30  ;;  %v1277_v33 = vpack.i.bf16 (!%p332_p8), %v431_v31, %v430_v30 }
  0x2d   : > { %1210 = vmatpush3.bf16.xpose.msk.msra.mxu0 (!%p332_p8), %vm1440_vm1, %v1205_v11  ;;  %424 = vst.msk [vmem:[#allocation4 + $0x10] sm:$0xff] (!%p332_p8), %vm421_vm0, %v1348_v21  ;;  %425 = vst.msk [vmem:[#allocation4 + $0x18] sm:$0xff] (!%p332_p8), %vm421_vm0, %v1348_v21 }
  0x2e   : > { %v1467_v22 = vld [vmem:[#allocation2] sm:$0xff]  ;;  %1212 = vmatprep.subr.bf16.mxu1 %v1211_v32  ;;  %s1567_s14 = smov (!%p396_p9, %s1336_s14), 1 }
  0x2f   : > { %v1472_v25 = vld [vmem:[#allocation2 + $0x8] sm:$0xff]  ;;  %1214 = vmatpush3.bf16.msra.mxu1 %v1211_v32  ;;  %v765_v57 = vld [vmem:[#allocation2 + $0x10] sm:$0xff]  ;;  %s1160_s28 = sshll.u32 %s1567_s14, 4 }
  0x30   : > { %v766_v56 = vld [vmem:[#allocation2 + $0x18] sm:$0xff]  ;;  %s406_s4 = scalar_lea.vmem %s1556_s3, %s1160_s28 }
  0x34   : > { %1182 = vmatmul.mubr.msk.f32.vlgmr.msra.gmra.mrb[0].mxu0 %vm421_vm0, %v427_v12 }
 0x107   : > { %v1183_v14 = vpop.f32.mrb[0].mxu0 }
 0x108   : > { %v511_v15 = vpop.f32.mrb[1].mxu0  ;;  %v521_v17 = vmul.f32 0.125, %v1183_v14 }
 0x109   : > { %v520_v16 = vmul.f32 0.125, %v511_v15 }
 0x10a   : > { %v528_v19 = vsel %vm524_vm3, %v521_v17, -inf }
 0x10b   : > { %v525_v18 = vsel %vm524_vm3, %v520_v16, -inf }
 0x10c   : > { %526 = vmax.xlane.f32.xlu0 %v525_v18 }
 0x110   : > { %529 = vmax.xlane.f32.xlu0 %v528_v19 }
 0x126   : > { %1272 = vrot.lane.b32.xlu0 %v1271_v10, %s1349_s12 }
 0x199   : > { %v527_v23 = vpop.xlane.xlu0 %526 }
 0x19a   : > { %v1470_v24 = vmax.f32 %v1467_v22, %v527_v23  ;;  %v799_v23 = vld [vmem:[#allocation3 + $0x18] sm:$0xff] }
 0x19c   : > { %v533_v26 = vsub.f32 %v1467_v22, %v1470_v24  ;;  %669 = vst.msk [vmem:[#allocation2] sm:$0xff] %vm412_vm2, %v1470_v24  ;;  %541 = vperm.xlu1 %1270, %v1470_v24  }
 0x19d   : > { %v530_v27 = vpop.xlane.xlu0 %529 }
 0x19e   : > { %v1480_v28 = vmax.f32 %v1472_v25, %v530_v27  ;;  %v535_v20 = vmul.f32 1.442695, %v533_v26  ;;  %v798_v27 = vld [vmem:[#allocation3 + $0x10] sm:$0xff] }
 0x1a0   : > { %v534_v29 = vsub.f32 %v1472_v25, %v1480_v28  ;;  %670 = vst.msk [vmem:[#allocation2 + $0x8] sm:$0xff] %vm412_vm2, %v1480_v28  ;;  %546 = vperm.xlu1 %1270, %v1480_v28   ;;  %v556_v25 = vld [vmem:[#allocation3 + $0x8] sm:$0xff] }
 0x1a1   : > { %v1273_v34 = vpop.permute.xlu0 %1272 }
 0x1a2   : > { %v1275_v35 = vunpack.i.h.bf16 %v1273_v34  ;;  %v1274_v36 = vunpack.i.l.bf16 %v1273_v34  ;;  %v537_v21 = vmul.f32 1.442695, %v534_v29 }
 0x1a4   : > { %671 = vrot.lane.b32.xlu1 %v426_v9, %s1349_s12  ;;  %v1215_v37 = vpack.c.bf16 %v1275_v35, %v1274_v36  ;;  %v555_v36 = vld [vmem:[#allocation3] sm:$0xff] }
 0x1a6   : > { %1217 = vmatprep.subr.msk.bf16.mxu1 %vm1440_vm1, %v1215_v37 }
 0x1a8   : > { %673 = vrot.lane.b32.xlu1 %v427_v12, %s1349_s12 }
 0x21b   : > { %v542_v38 = vpop.permute.xlu1 %541 }
 0x21c   : > { %v549_v39 = vsub.f32 %v520_v16, %v542_v38 }
 0x21e   : > { %v551_v40 = vmul.f32 1.442695, %v549_v39 }
 0x21f   : > { %v547_v41 = vpop.permute.xlu1 %546 }
 0x220   : > { %1282 = vpow2.f32 %v551_v40  ;;  %v550_v42 = vsub.f32 %v521_v17, %v547_v41 }
 0x222   : > { %v553_v43 = vmul.f32 1.442695, %v550_v42 }
 0x223   : > { %v672_v45 = vpop.permute.xlu1 %671 }
 0x224   : > { %1284 = vpow2.f32 %v553_v43 }
 0x227   : > { %v674_v47 = vpop.permute.xlu1 %673 }
 0x22a   : > { %v1283_v44 = vpop.eup %1282 }
 0x22b   : > { %1188 = vmatprep.mubr.msk.f32.mxu1 %vm524_vm3, %v1283_v44  ;;  %v559_v14 = vsel %vm524_vm3, %v1283_v44, 0.0 }
 0x22e   : > { %v1285_v46 = vpop.eup %1284 }
 0x22f   : > { %1189 = vmatmul.mubr.msk.f32.vlgmr.msra.gmra.mrb[0].mxu1 %vm524_vm3, %v1285_v46  ;;  %v562_v15 = vsel %vm524_vm3, %v1285_v46, 0.0 }
 0x230   : > { %1220 = vmatpush3.bf16.xpose.msk.msra.mxu1 %vm1440_vm1, %v1215_v37  ;;  %1195 = vmatprep.mubr.msk.f32.mxu1 %vm421_vm0, %v672_v45 }
 0x237   : > { %1196 = vmatmul.mubr.msk.f32.vlgmr.msra.gmra.mrb[2].mxu1 %vm421_vm0, %v674_v47 }
 0x302   : > { %v1498_v48 = vpop.f32.mrb[0].mxu1 }
 0x303   : > { %v1500_v49 = vpop.f32.mrb[1].mxu1 }
 0x30a   : > { %v1197_v50 = vpop.f32.mrb[2].mxu1 }
 0x30b   : > { %v763_v51 = vmul.f32 0.125, %v1197_v50  ;;  %v753_v52 = vpop.f32.mrb[3].mxu1 }
 0x30c   : > { %v762_v53 = vmul.f32 0.125, %v753_v52 }
 0x30d   : > { %v770_v54 = vsel %vm524_vm3, %v763_v51, -inf }
 0x30e   : > { %771 = vmax.xlane.f32.xlu0 %v770_v54  ;;  %v767_v55 = vsel %vm524_vm3, %v762_v53, -inf }
 0x30f   : > { %768 = vmax.xlane.f32.xlu1 %v767_v55 }
 0x39b   : > { %v772_v58 = vpop.xlane.xlu0 %771 }
 0x39c   : > { %v774_v59 = vmax.f32 %v766_v56, %v772_v58  ;;  %v769_v60 = vpop.xlane.xlu1 %768 }
 0x39d   : > { %v773_v61 = vmax.f32 %v765_v57, %v769_v60 }
 0x39e   : > { %v776_v62 = vsub.f32 %v766_v56, %v774_v59  ;;  %921 = vst.msk [vmem:[#allocation2 + $0x18] sm:$0xff] %vm412_vm2, %v774_v59  ;;  %788 = vperm.xlu0 %1276, %v774_v59  }
 0x39f   : > { %v775_v63 = vsub.f32 %v765_v57, %v773_v61  ;;  %920 = vst.msk [vmem:[#allocation2 + $0x10] sm:$0xff] %vm412_vm2, %v773_v61  ;;  %783 = vperm.xlu1 %1270, %v773_v61  }
 0x3a0   : > { %v779_v17 = vmul.f32 1.442695, %v776_v62 }
 0x3a1   : > { %v777_v16 = vmul.f32 1.442695, %v775_v63 }
 0x3a3   : > { %1278 = vrot.lane.b32.xlu1 %v1277_v33, %s1349_s12 }
 0x41d   : > { %v789_v0 = vpop.permute.xlu0 %788 }
 0x41e   : > { %v792_v1 = vsub.f32 %v763_v51, %v789_v0  ;;  %v784_v2 = vpop.permute.xlu1 %783  ;;  %v903_v51 = vld [vmem:[#allocation4 + $0x18] sm:$0xff] }
 0x41f   : > { %v791_v3 = vsub.f32 %v762_v53, %v784_v2  ;;  %v902_v53 = vld [vmem:[#allocation4 + $0x10] sm:$0xff]  ;;  %v651_v2 = vld [vmem:[#allocation4] sm:$0xff] }
 0x420   : > { %v795_v4 = vmul.f32 1.442695, %v792_v1 }
 0x421   : > { %v793_v5 = vmul.f32 1.442695, %v791_v3 }
 0x422   : > { %1286 = vpow2.f32 %v795_v4  ;;  %v1279_v6 = vpop.permute.xlu1 %1278 }
 0x423   : > { %1288 = vpow2.f32 %v793_v5  ;;  %v1281_v7 = vunpack.i.h.bf16 %v1279_v6  ;;  %v1280_v8 = vunpack.i.l.bf16 %v1279_v6  ;;  %v652_v5 = vld [vmem:[#allocation4 + $0x8] sm:$0xff] }
 0x424   : > { %1290 = vpow2.f32 %v777_v16 }
 0x425   : > { %v1221_v9 = vpack.c.bf16 %v1281_v7, %v1280_v8  ;;  %1292 = vpow2.f32 %v779_v17 }
 0x426   : > { %1294 = vpow2.f32 %v535_v20 }
 0x427   : > { %1222 = vmatprep.subr.bf16.mxu0 %v1221_v9  ;;  %1296 = vpow2.f32 %v537_v21 }
 0x428   : > { %1224 = vmatpush3.bf16.msra.mxu0 %v1221_v9 }
 0x42c   : > { %v1287_v10 = vpop.eup %1286 }
 0x42d   : > { %v1289_v11 = vpop.eup %1288  ;;  %v805_v12 = vsel %vm524_vm3, %v1287_v10, 0.0 }
 0x42e   : > { %806 = vadd.xlane.f32.xlu0 %v805_v12  ;;  %1202 = vmatprep.mubr.msk.f32.mxu0 %vm524_vm3, %v1289_v11  ;;  %v802_v13 = vsel %vm524_vm3, %v1289_v11, 0.0  ;;  %v1291_v18 = vpop.eup %1290 }
 0x42f   : > { %803 = vadd.xlane.f32.xlu1 %v802_v13  ;;  %1203 = vmatmul.mubr.msk.f32.vlgmr.msra.gmra.mrb[2].mxu0 %vm524_vm3, %v1287_v10  ;;  %v1293_v19 = vpop.eup %1292  ;;  %v800_v32 = vmul.f32 %v1291_v18, %v798_v27 }
 0x430   : > { %v801_v30 = vmul.f32 %v1293_v19, %v799_v23  ;;  %v1295_v33 = vpop.eup %1294 }
 0x431   : > { %v557_v22 = vmul.f32 %v1295_v33, %v555_v36  ;;  %v1297_v24 = vpop.eup %1296 }
 0x432   : > { %v558_v29 = vmul.f32 %v1297_v24, %v556_v25 }
 0x433   : > { %560 = vadd.xlane.f32.xlu1 %v559_v14 }
 0x437   : > { %563 = vadd.xlane.f32.xlu1 %v562_v15 }
 0x448   : > { %906 = vperm.xlu1 %1270, %v1291_v18  }
 0x44c   : > { %911 = vperm.xlu1 %1270, %v1293_v19  }
 0x4bb   : > { %v807_v31 = vpop.xlane.xlu0 %806 }
 0x4bc   : > { %v809_v34 = vadd.f32 %v807_v31, %v801_v30  ;;  %v804_v35 = vpop.xlane.xlu1 %803 }
 0x4bd   : > { %v808_v37 = vadd.f32 %v804_v35, %v800_v32 }
 0x4be   : > { %811 = vst.msk [vmem:[#allocation3 + $0x18] sm:$0xff] %vm412_vm2, %v809_v34 }
 0x4bf   : > { %810 = vst.msk [vmem:[#allocation3 + $0x10] sm:$0xff] %vm412_vm2, %v808_v37 }
 0x4c0   : > { %v561_v26 = vpop.xlane.xlu1 %560 }
 0x4c1   : > { %v565_v28 = vadd.f32 %v561_v26, %v557_v22 }
 0x4c3   : > { %568 = vst.msk [vmem:[#allocation3] sm:$0xff] %vm412_vm2, %v565_v28 }
 0x4c4   : > { %v564_v38 = vpop.xlane.xlu1 %563 }
 0x4c5   : > { %v566_v39 = vadd.f32 %v564_v38, %v558_v29  ;;  %v946_v40 = vld [vmem:[#allocation3 + $0x18] sm:$0xff] }
 0x4c6   : > { %1298 = vrcp.f32 %v946_v40  ;;  %v945_v41 = vld [vmem:[#allocation3 + $0x10] sm:$0xff] }
 0x4c7   : > { %569 = vst.msk [vmem:[#allocation3 + $0x8] sm:$0xff] %vm412_vm2, %v566_v39  ;;  %1300 = vrcp.f32 %v945_v41 }
 0x4c8   : > { %v907_v50 = vpop.permute.xlu1 %906 }
 0x4c9   : > { %v914_v55 = vmul.f32 %v907_v50, %v902_v53 }
 0x4ca   : > { %v927_v42 = vld [vmem:[#allocation3] sm:$0xff] }
 0x4cb   : > { %1302 = vrcp.f32 %v927_v42 }
 0x4cc   : > { %v912_v52 = vpop.permute.xlu1 %911 }
 0x4cd   : > { %v915_v54 = vmul.f32 %v912_v52, %v903_v51 }
 0x4ce   : > { %v928_v45 = vld [vmem:[#allocation3 + $0x8] sm:$0xff] }
 0x4cf   : > { %1304 = vrcp.f32 %v928_v45 }
 0x4d0   : > { %v1299_v43 = vpop.eup %1298 }
 0x4d1   : > { %v1301_v44 = vpop.eup %1300  ;;  %956 = vperm.xlu1 %1270, %v1299_v43  }
 0x4d2   : > { %951 = vperm.xlu0 %1276, %v1301_v44  }
 0x4d5   : > { %655 = vperm.xlu1 %1270, %v1295_v33   ;;  %v1303_v46 = vpop.eup %1302 }
 0x4d9   : > { %660 = vperm.xlu1 %1270, %v1297_v24   ;;  %v1305_v47 = vpop.eup %1304 }
 0x4dd   : > { %933 = vperm.xlu1 %1270, %v1303_v46  }
 0x4e1   : > { %938 = vperm.xlu1 %1270, %v1305_v47  }
 0x502   : > { %v1204_v56 = vpop.f32.mrb[2].mxu0 }
 0x503   : > { %v917_v57 = vadd.f32 %v1204_v56, %v915_v54  ;;  %v892_v58 = vpop.f32.mrb[3].mxu0 }
 0x504   : > { %v916_v59 = vadd.f32 %v914_v55, %v892_v58 }
 0x505   : > { %919 = vst.msk [vmem:[#allocation4 + $0x18] sm:$0xff] %vm421_vm0, %v917_v57 }
 0x506   : > { %918 = vst.msk [vmem:[#allocation4 + $0x10] sm:$0xff] %vm421_vm0, %v916_v59 }
 0x50c   : > { %v944_v60 = vld [vmem:[#allocation4 + $0x18] sm:$0xff] }
 0x50d   : > { %v943_v63 = vld [vmem:[#allocation4 + $0x10] sm:$0xff] }
 0x550   : > { %v957_v61 = vpop.permute.xlu1 %956 }
 0x551   : > { %v960_v62 = vmul.f32 %v957_v61, %v944_v60  ;;  %v952_v0 = vpop.permute.xlu0 %951 }
 0x552   : > { %v959_v1 = vmul.f32 %v952_v0, %v943_v63 }
 0x553   : > { %965 = vrot.lane.b32.xlu1 %v960_v62, %s1349_s12 }
 0x554   : > { %v656_v3 = vpop.permute.xlu1 %655  ;;  %963 = vrot.lane.b32.xlu0 %v959_v1, %s1349_s12 }
 0x555   : > { %v663_v4 = vmul.f32 %v656_v3, %v651_v2 }
 0x557   : > { %v665_v6 = vadd.f32 %v663_v4, %v1500_v49 }
 0x558   : > { %v661_v7 = vpop.permute.xlu1 %660 }
 0x559   : > { %667 = vst.msk [vmem:[#allocation4] sm:$0xff] %vm421_vm0, %v665_v6  ;;  %v664_v8 = vmul.f32 %v661_v7, %v652_v5 }
 0x55b   : > { %v666_v9 = vadd.f32 %v1498_v48, %v664_v8 }
 0x55c   : > { %v934_v10 = vpop.permute.xlu1 %933 }
 0x55d   : > { %668 = vst.msk [vmem:[#allocation4 + $0x8] sm:$0xff] %vm421_vm0, %v666_v9 }
 0x560   : > { %v939_v12 = vpop.permute.xlu1 %938  ;;  %v925_v13 = vld [vmem:[#allocation4] sm:$0xff] }
 0x561   : > { %v941_v49 = vmul.f32 %v934_v10, %v925_v13 }
 0x564   : > { %v926_v11 = vld [vmem:[#allocation4 + $0x8] sm:$0xff] }
 0x565   : > { %v942_v14 = vmul.f32 %v939_v12, %v926_v11 }
 0x5c5   : > { %v966_v15 = vpop.permute.xlu1 %965 }
 0x5c6   : > { %v970_v16 = vsel %vm421_vm0, %v942_v14, %v966_v15  ;;  %v964_v17 = vpop.permute.xlu0 %963 }
 0x5c7   : > { %972 = vst [vmem:[%s406_s4 + $0x8] sm:$0xff] %v970_v16  ;;  %v969_v48 = vsel %vm421_vm0, %v941_v49, %v964_v17 }
 0x5c8   : > { %971 = vst [vmem:[%s406_s4] sm:$0xff] %v969_v48 }
 0x5c9 PF: > { %s13_s16 = sadd.s32 1, %s1344_s16   ;;  %s1560_s12 = smov %s1332_s13 }
 0x5ca   : > { %p10_p10 = scmp.ge.s32.totalorder %s13_s16, 4   ;;  %s1561_s13 = smov %s1409_s21 }
 0x5cb   : > { %s1562_s14 = smov %s1340_s15  ;;  %s1563_s15 = smov %s1565_s17 }
 0x5cc   :  { %12 = sbr.rel (!%p10_p10) target bundleno = 3 (0x3), region = 208 }

// kernel: hybrid_conditioner_forward.4
= control target key start
LH: loop header
LB: loop body
LE: loop exit
PB: predicated region body
PF: predicated region fallthrough
CT: control target
= control target key end

     0   :  { %s482_s12 = smov 0   ;;  %s484_s13 = smov 0   ;;  %s521_s0 = inlined_call_operand.vmem [shape: f32[2,4,256], index: 0, kind: input, shape index: {}]   ;;  %s522_s1 = inlined_call_operand.vmem [shape: f32[4,4], index: 1, kind: input, shape index: {}]   ;;  %s523_s2 = inlined_call_operand.vmem [shape: f32[4,1], index: 2, kind: input, shape index: {}]   ;;  %s524_s3 = inlined_call_operand.vmem [shape: f32[2,4,256], index: 3, kind: output, shape index: {}]  }
   0x1   :  { %s486_s14 = smov 0  }
   0x2 LB: > { %s25_s15 = sadd.s32 1, %s454_s13  ;;  %p396_p0 = scmp.ge.s32.totalorder %s458_s14, 1  ;;  %s458_s14 = sphi %s486_s14, %s13_s14   ;;  %s454_s13 = sphi %s484_s13, %s526_s13   ;;  %s450_s12 = sphi %s482_s12, %s525_s12  }
   0x3   : > { %p27_p1 = scmp.ge.s32.totalorder %s25_s15, 2  ;;  %p158_p2 = scmp.lt.s32.totalorder %s458_s14, 3 }
   0x5   : > { %s528_s15 = smov (%p27_p1, %s25_s15), 0  ;;  %p159_p3 = pnand %p396_p0, %p158_p2 }
   0x6   : > { %p191_p4 = scmp.lt.s32.totalorder (!%p159_p3), %s450_s12, 1  ;;  %v460_v0 = vmov (!%p159_p3), 0.0   ;;  %v212_v1 = vld [vmem:[%s523_s2] sm:$0xf] (!%p159_p3)  ;;  %v461_v2 = vmov (!%p159_p3), 0   ;;  %vm224_vm0 = vcmask (!%p159_p3), 1043456  }
   0x7   : > { %162 = sbr.rel (%p159_p3) target bundleno = 240 (0xf0), region = 32  ;;  %293 = vmatprep.mubr.f32.mxu0 (!%p159_p3), %v460_v0  ;;  %434 = vset.pattern.permute.xlu0 (!%p159_p3), %v461_v2  ;;  %v210_v5 = vld [vmem:[%s522_s1] sm:$0xf] (!%p159_p3)  ;;  %vm220_vm1 = vcmask (!%p159_p3), 31744  }
   0x8   : > { %215 = vperm.xlu0 (!%p159_p3), %434, %v212_v1  }
   0xe   : > { %s530_s12 = smov (!%p191_p4, %s450_s12), 1 }
   0xf   : > { %s406_s18 = sshll.u32 %s530_s12, 3 }
  0x10   : > { %s198_s21 = scalar_lea.vmem %s521_s0, %s406_s18  ;;  %s208_s26 = scalar_lea.vmem %s524_s3, %s406_s18 }
  0x11   : > { %v211_v3 = vld [vmem:[%s198_s21] sm:$0xff] }
  0x12   : > { %v219_v4 = vcombine.high %v211_v3, %v211_v3 }
  0x14   : > { %401 = vmatprep.subr.msk.mxu0 %vm224_vm0, %v219_v4 }
  0x15   : > { %402 = vmatpush1.msk.msra.mxu0 %vm224_vm0, %v211_v3 }
  0x16   : > { %403 = vmatmul.mubr.msk.f32.vlgmr.msra.gmra.mrb[0].mxu0 %vm220_vm1, %v210_v5 }
  0x87   : > { %v216_v6 = vpop.permute.xlu0 %215 }
  0xe9   : > { %v295_v7 = vpop.f32.mrb[0].mxu0 }
  0xea   : > { %v296_v8 = vadd.f32 %v295_v7, %v216_v6  ;;  %v297_v9 = vpop.f32.mrb[1].mxu0 }
  0xeb   : > { %v298_v10 = vadd.f32 %v297_v9, %v216_v6 }
  0xed   : > { %v302_v11 = vcombine.low %v296_v8, %v298_v10 }
  0xef   : > { %304 = vst [vmem:[%s208_s26] sm:$0xff] %v302_v11 }
  0xf0 PF: > { %s13_s14 = sadd.s32 1, %s458_s14   ;;  %s525_s12 = smov %s454_s13 }
  0xf1   : > { %p10_p5 = scmp.ge.s32.totalorder %s13_s14, 4   ;;  %s526_s13 = smov %s528_s15 }
  0xf3   :  { %12 = sbr.rel (!%p10_p5) target bundleno = 2 (0x2), region = 62 }

</bundles_post_ra>
